<compile_context>
chip_gen: v5e
topology: v5e:2x2
jax: 0.10.0
libtpu: 0.0.40
codegen_flags: <defaults>
</compile_context>

<pallas_src>
import math
from functools import partial

import jax
import jax.numpy as jnp
import numpy as np
from jax import lax
from jax.experimental import pallas as pl
from jax.experimental.pallas import tpu as pltpu


# ----------------------------------------------------------------------------
# Kernel A: per (b, c) GCN attention scores + channel-accumulated node MLP
# ----------------------------------------------------------------------------
def _attn_node_kernel(adj_ref, xw_ref, bqkv_ref, fl_ref, w1_ref, b1_ref,
                      w2_ref, b2_ref, a_ref, x_ref, h_acc,
                      *, num_heads, attn_dim, out_dim):
    c = pl.program_id(1)
    num_c = pl.num_programs(1)
    n = adj_ref.shape[-1]
    ds = attn_dim // num_heads
    inv_scale = 1.0 / math.sqrt(out_dim)      # intentional: matches the module

    @pl.when(c == 0)
    def _():
        h_acc[...] = jnp.zeros_like(h_acc)

    # --- DenseGCNConv normalization: diag := 1, then D^-1/2 A D^-1/2 --------
    adj = adj_ref[0, 0].astype(jnp.float32)                          # (N, N)
    row = lax.broadcasted_iota(jnp.int32, (n, n), 0)
    col = lax.broadcasted_iota(jnp.int32, (n, n), 1)
    adj_sl = jnp.where(row == col, 1.0, adj)
    deg_r = jnp.maximum(jnp.sum(adj_sl, axis=-1, keepdims=True), 1.0)   # (N, 1)
    # Column-side degree via an axis=-2 reduce; equals deg_r^T for the
    # symmetric adjacencies GDSS uses and avoids an extra XLU transpose.
    deg_c = jnp.maximum(jnp.sum(adj_sl, axis=-2, keepdims=True), 1.0)   # (1, N)
    adj_n = lax.rsqrt(deg_r) * adj_sl * lax.rsqrt(deg_c)

    # --- fused Q|K|V projection: adj_n @ (x @ Wqkv) + bqkv  (bf16 MXU, f32) --
    qkv = jnp.dot(adj_n.astype(jnp.bfloat16), xw_ref[0, 0],
                  preferred_element_type=jnp.float32) + bqkv_ref[0]     # (N, Dtot)

    # --- head-batched scores: ONE MXU group + ONE bulk tanh over all heads ---
    q_h = jnp.transpose(qkv[:, :attn_dim].reshape(n, num_heads, ds),
                        (1, 0, 2)).astype(jnp.bfloat16)                 # (H, N, ds)
    k_h = jnp.transpose(qkv[:, attn_dim:2 * attn_dim].reshape(n, num_heads, ds),
                        (1, 0, 2)).astype(jnp.bfloat16)                 # (H, N, ds)
    s = jnp.einsum("hnd,hmd->hnm", q_h, k_h,
                   preferred_element_type=jnp.float32)                  # (H, N, N)
    a = jnp.tanh(s * inv_scale).sum(axis=0) * (1.0 / num_heads)         # mean heads
    a = 0.5 * (a + a.T)                                                 # symmetrize
    a_ref[0, 0] = a.astype(a_ref.dtype)

    # --- fused node path: accumulate sum_c V_c @ W1_c in VMEM ---------------
    v = qkv[:, 2 * attn_dim:].astype(jnp.bfloat16)                      # (N, Do)
    h_acc[...] += jnp.dot(v, w1_ref[0], preferred_element_type=jnp.float32)

    @pl.when(c == num_c - 1)
    def _():
        h = h_acc[...] + b1_ref[...]
        h = jnp.where(h > 0, h, jnp.exp(jnp.minimum(h, 0.0)) - 1.0)     # ELU(1)
        o = jnp.dot(h, w2_ref[...], preferred_element_type=jnp.float32) + b2_ref[...]
        x_ref[0] = jnp.tanh(o * fl_ref[0]).astype(x_ref.dtype)          # mask_x, tanh


def attention_and_node_mlp(adj, xw, bqkv, flags_col, w1c, b1, w2, b2,
                           *, num_heads, attn_dim, out_dim):
    B, C, N, _ = adj.shape
    Dtot = xw.shape[-1]
    Do = w1c.shape[1]
    Hd = w1c.shape[-1]
    Fout = w2.shape[-1]
    kernel = partial(_attn_node_kernel, num_heads=num_heads,
                     attn_dim=attn_dim, out_dim=out_dim)
    a_all, x_out = pl.pallas_call(
        kernel,
        out_shape=(jax.ShapeDtypeStruct((C, B, N, N), jnp.bfloat16),   # A (bf16)
                   jax.ShapeDtypeStruct((B, N, Fout), jnp.float32)),   # node out
        grid=(B, C),
        in_specs=[
            pl.BlockSpec((1, 1, N, N), lambda b, c: (b, c, 0, 0)),     # adj
            pl.BlockSpec((1, 1, N, Dtot), lambda b, c: (c, b, 0, 0)),  # x @ Wqkv (bf16)
            pl.BlockSpec((1, 1, Dtot), lambda b, c: (c, 0, 0)),        # bqkv
            pl.BlockSpec((1, N, 1), lambda b, c: (b, 0, 0)),           # flags column
            pl.BlockSpec((1, Do, Hd), lambda b, c: (c, 0, 0)),         # W1_c (bf16)
            pl.BlockSpec((1, Hd), lambda b, c: (0, 0)),                # b1
            pl.BlockSpec((Hd, Fout), lambda b, c: (0, 0)),             # W2
            pl.BlockSpec((1, Fout), lambda b, c: (0, 0)),              # b2
        ],
        out_specs=(
            pl.BlockSpec((1, 1, N, N), lambda b, c: (c, b, 0, 0)),     # A
            pl.BlockSpec((1, N, Fout), lambda b, c: (b, 0, 0)),        # x_out (resident over c)
        ),
        scratch_shapes=[pltpu.VMEM((N, Hd), jnp.float32)],
        compiler_params=pltpu.CompilerParams(
            dimension_semantics=("parallel", "arbitrary")),
    )(adj, xw, bqkv, flags_col, w1c, b1, w2, b2)
    return a_all, x_out


# ----------------------------------------------------------------------------
# Kernel B: edge MLP over lane-dense (N, N) planes + symmetrize + mask_adjs
#   features per edge = [A_0..A_{C-1}, adj_0..adj_{C-1}]  (2C scalars)
# ----------------------------------------------------------------------------
def _edge_mlp_kernel(a_ref, adj_ref, fl_ref, w1_ref, b1_ref, w2_ref, b2_ref,
                     o_ref, *, C, Hd, Co):
    fl = fl_ref[0]                                    # (1, N) f32
    mask2d = jnp.transpose(fl) * fl                   # flag outer product (N, N)
    zero = jnp.zeros_like(mask2d)

    def feat(f):
        # Lazy per-plane f32 upcast: only one feature plane live at a time.
        if f < C:
            return a_ref[f, 0].astype(jnp.float32)    # bf16 A plane
        return adj_ref[0, f - C].astype(jnp.float32)  # f32 adj plane

    outs = [zero + b2_ref[co] for co in range(Co)]
    for m in range(Hd):                               # static tiny loops (VPU MACs)
        h = zero + b1_ref[m]
        for f in range(2 * C):
            h = h + w1_ref[f, m] * feat(f)
        h = jnp.where(h > 0, h, jnp.exp(jnp.minimum(h, 0.0)) - 1.0)   # ELU(1)
        for co in range(Co):
            outs[co] = outs[co] + w2_ref[m, co] * h
    for co in range(Co):
        o = (outs[co] + jnp.transpose(outs[co])) * mask2d   # symmetrize + mask_adjs
        o_ref[0, co] = o.astype(o_ref.dtype)


def edge_mlp(a_all, adj, flags, w1, b1, w2, b2):
    # TODO(synk): for very large N on v7x (64 MiB VMEM), row-tile this kernel
    # (grid=(B, N//Tr)) and move symmetrize + mask to an XLA epilogue.
    C, B, N, _ = a_all.shape
    Hd = w1.shape[-1]
    Co = w2.shape[-1]
    fl3 = flags.reshape(B, 1, N).astype(jnp.float32)
    smem = pl.BlockSpec(memory_space=pltpu.MemorySpace.SMEM)
    return pl.pallas_call(
        partial(_edge_mlp_kernel, C=C, Hd=Hd, Co=Co),
        out_shape=jax.ShapeDtypeStruct((B, Co, N, N), jnp.float32),
        grid=(B,),
        in_specs=[
            pl.BlockSpec((C, 1, N, N), lambda b: (0, b, 0, 0)),   # A channels (bf16)
            pl.BlockSpec((1, C, N, N), lambda b: (b, 0, 0, 0)),   # adj channels (f32)
            pl.BlockSpec((1, 1, N), lambda b: (b, 0, 0)),         # flags
            smem, smem, smem, smem,                               # tiny MLP weights
        ],
        out_specs=pl.BlockSpec((1, Co, N, N), lambda b: (b, 0, 0, 0)),
        compiler_params=pltpu.CompilerParams(dimension_semantics=("parallel",)),
    )(a_all, adj, fl3, w1, b1, w2, b2)


# ----------------------------------------------------------------------------
# AttentionLayer forward
# ----------------------------------------------------------------------------
def attention_layer_forward(params, x, adj, flags, *, num_heads):
    B, N, Fi = x.shape
    C = adj.shape[1]
    Da = params["wq"].shape[-1]
    Do = params["wv"].shape[-1]
    assert Da % num_heads == 0, "attn_dim must be divisible by num_heads"
    # TODO(synk): if real workloads have tiny N/Do like the test, pack multiple
    # graphs into the 128-lane dimension at the wrapper level for lane density.

    # Fused Q|K|V weights/biases per channel; hoisted x @ Wqkv for all channels
    # (one lane-dense XLA matmul), bf16 operands for in-kernel MXU matmuls.
    wqkv = jnp.concatenate([params["wq"], params["wk"], params["wv"]], axis=-1)
    bqkv = jnp.concatenate([params["bq"], params["bk"], params["bv"]], axis=-1)
    xw = jnp.einsum("bnf,cfd->cbnd", x, wqkv).astype(jnp.bfloat16)   # (C,B,N,Dtot)

    Hd = params["mc_w1"].shape[-1]
    w1c = params["mc_w1"].reshape(C, Do, Hd).astype(jnp.bfloat16)    # per-channel W1 rows
    flags_col = flags.reshape(B, N, 1).astype(jnp.float32)

    a_all, x_out = attention_and_node_mlp(
        adj, xw, bqkv, flags_col, w1c,
        params["mc_b1"].reshape(1, -1), params["mc_w2"],
        params["mc_b2"].reshape(1, -1),
        num_heads=num_heads, attn_dim=Da, out_dim=Do)

    adj_out = edge_mlp(a_all, adj, flags, params["mlp_w1"], params["mlp_b1"],
                       params["mlp_w2"], params["mlp_b2"])           # (B, Co, N, N)
    return x_out, adj_out


# ----------------------------------------------------------------------------
# Deterministic parameter init (shapes from AttentionLayer.__init__)
# ----------------------------------------------------------------------------
def init_params(key, conv_input_dim, attn_dim, conv_output_dim,
                input_dim, output_dim, num_heads, num_linears):
    # TODO(synk): only num_linears == 2 supported (fused 2-layer MLP kernels).
    assert num_linears == 2
    hidden_dim = 2 * max(input_dim, output_dim)
    C, Fi, Da, Do, Co = input_dim, conv_input_dim, attn_dim, conv_output_dim, output_dim
    ks = jax.random.split(key, 10)

    def glorot(k, shape):
        lim = math.sqrt(6.0 / (shape[-2] + shape[-1]))
        return jax.random.uniform(k, shape, jnp.float32, -lim, lim)

    return dict(
        wq=glorot(ks[0], (C, Fi, Da)), bq=0.01 * jax.random.normal(ks[1], (C, 1, Da)),
        wk=glorot(ks[2], (C, Fi, Da)), bk=0.01 * jax.random.normal(ks[3], (C, 1, Da)),
        wv=glorot(ks[4], (C, Fi, Do)), bv=0.01 * jax.random.normal(ks[5], (C, 1, Do)),
        mc_w1=glorot(ks[6], (C * Do, hidden_dim)), mc_b1=jnp.zeros((hidden_dim,), jnp.float32),
        mc_w2=glorot(ks[7], (hidden_dim, Do)), mc_b2=jnp.zeros((Do,), jnp.float32),
        mlp_w1=glorot(ks[8], (2 * C, hidden_dim)), mlp_b1=jnp.zeros((hidden_dim,), jnp.float32),
        mlp_w2=glorot(ks[9], (hidden_dim, Co)), mlp_b2=jnp.zeros((Co,), jnp.float32),
    )


# ----------------------------------------------------------------------------
# Pure-JAX reference (sanity check of kernel semantics)
# ----------------------------------------------------------------------------
def _ref_forward(params, x, adj, flags, num_heads):
    B, N, _ = x.shape
    C = adj.shape[1]
    H = num_heads
    Do = params["wv"].shape[-1]
    eye = jnp.eye(N)

    def mlp_ref(xx, w1, b1, w2, b2):
        h = xx @ w1 + b1
        h = jnp.where(h > 0, h, jnp.exp(jnp.minimum(h, 0.0)) - 1.0)
        return h @ w2 + b2

    v_list, a_list = [], []
    for c in range(C):
        a = adj[:, c]
        a_sl = jnp.where(eye > 0, 1.0, a)
        d = jnp.maximum(a_sl.sum(-1), 1.0) ** -0.5
        a_n = d[:, :, None] * a_sl * d[:, None, :]

        def gcn(w, b):
            return jnp.einsum("bij,bjf->bif", a_n, x @ w) + b.reshape(1, 1, -1)

        Q = gcn(params["wq"][c], params["bq"][c])
        K = gcn(params["wk"][c], params["bk"][c])
        V = gcn(params["wv"][c], params["bv"][c])
        ds = Q.shape[-1] // H
        A = 0.0
        for h in range(H):
            Qh, Kh = Q[..., h * ds:(h + 1) * ds], K[..., h * ds:(h + 1) * ds]
            A = A + jnp.tanh(jnp.einsum("bnd,bmd->bnm", Qh, Kh) / math.sqrt(Do))
        A = A / H
        A = 0.5 * (A + jnp.swapaxes(A, -1, -2))
        v_list.append(V)
        a_list.append(A)

    x_out = mlp_ref(jnp.concatenate(v_list, -1),
                    params["mc_w1"], params["mc_b1"], params["mc_w2"], params["mc_b2"])
    x_out = jnp.tanh(x_out * flags[:, :, None])
    mlp_in = jnp.concatenate([jnp.stack(a_list, -1), jnp.transpose(adj, (0, 2, 3, 1))], -1)
    mo = mlp_ref(mlp_in, params["mlp_w1"], params["mlp_b1"], params["mlp_w2"], params["mlp_b2"])
    _adj = jnp.transpose(mo, (0, 3, 1, 2))
    _adj = _adj + jnp.swapaxes(_adj, -1, -2)
    adj_out = _adj * flags[:, None, :, None] * flags[:, None, None, :]
    return x_out, adj_out


if __name__ == "__main__":
    B, N = 2, 16
    conv_input_dim, attn_dim, conv_output_dim = 4, 16, 8
    input_dim, output_dim = 2, 3          # adjacency channels in / out
    num_heads, num_linears = 4, 2

    key = jax.random.PRNGKey(0)
    kx, ka, kp = jax.random.split(key, 3)

    x = jax.random.normal(kx, (B, N, conv_input_dim), jnp.float32)
    a = (jax.random.uniform(ka, (B, input_dim, N, N)) > 0.6).astype(jnp.float32)
    adj = jnp.maximum(a, jnp.swapaxes(a, -1, -2))          # symmetric 0/1 adjacency
    flags = (jnp.arange(N) < N - 2).astype(jnp.float32)[None, :].repeat(B, axis=0)

    params = init_params(kp, conv_input_dim, attn_dim, conv_output_dim,
                         input_dim, output_dim, num_heads, num_linears)

    fwd = jax.jit(partial(attention_layer_forward, num_heads=num_heads))
    x_out, adj_out = fwd(params, x, adj, flags)
    jax.block_until_ready((x_out, adj_out))

    x_ref, adj_ref = _ref_forward(params, x, adj, flags, num_heads)
    np.testing.assert_allclose(np.asarray(x_out), np.asarray(x_ref), atol=5e-2, rtol=5e-2)
    np.testing.assert_allclose(np.asarray(adj_out), np.asarray(adj_ref), atol=5e-2, rtol=5e-2)
    assert x_out.shape == (B, N, conv_output_dim)
    assert adj_out.shape == (B, output_dim, N, N)

    print("KERNEL_OK")
</pallas_src>

<mosaic_0001>
module attributes {stable_mosaic.version = 11 : i64} {
  func.func @_attn_node_kernel(%arg0: i32, %arg1: i32, %arg2: memref<1x1x16x16xf32, #tpu.memory_space<vmem>>, %arg3: memref<1x1x16x40xbf16, #tpu.memory_space<vmem>>, %arg4: memref<1x1x40xf32, #tpu.memory_space<vmem>>, %arg5: memref<1x16x1xf32, #tpu.memory_space<vmem>>, %arg6: memref<1x8x6xbf16, #tpu.memory_space<vmem>>, %arg7: memref<1x6xf32, #tpu.memory_space<vmem>>, %arg8: memref<6x8xf32, #tpu.memory_space<vmem>>, %arg9: memref<1x8xf32, #tpu.memory_space<vmem>>, %arg10: memref<1x1x16x16xbf16, #tpu.memory_space<vmem>>, %arg11: memref<1x16x8xf32, #tpu.memory_space<vmem>>, %arg12: memref<16x6xf32, #tpu.memory_space<vmem>>) attributes {dimension_semantics = [#tpu.dimension_semantics<parallel>, #tpu.dimension_semantics<arbitrary>], iteration_bounds = array<i64: 2, 2>, scalar_prefetch = 0 : i64, scratch_operands = 1 : i64, tpu.core_type = #tpu.core_type<tc>, window_params = [{transform_indices = @transform_0, window_bounds = array<i64: 1, 1, 16, 16>}, {transform_indices = @transform_1, window_bounds = array<i64: 1, 1, 16, 40>}, {transform_indices = @transform_2, window_bounds = array<i64: 1, 1, 40>}, {transform_indices = @transform_3, window_bounds = array<i64: 1, 16, 1>}, {transform_indices = @transform_4, window_bounds = array<i64: 1, 8, 6>}, {pipeline_mode = #tpu.pipeline_mode<synchronous>, transform_indices = @transform_5, window_bounds = array<i64: 1, 6>}, {pipeline_mode = #tpu.pipeline_mode<synchronous>, transform_indices = @transform_6, window_bounds = array<i64: 6, 8>}, {pipeline_mode = #tpu.pipeline_mode<synchronous>, transform_indices = @transform_7, window_bounds = array<i64: 1, 8>}, {transform_indices = @transform_8, window_bounds = array<i64: 1, 1, 16, 16>}, {transform_indices = @transform_9, window_bounds = array<i64: 1, 16, 8>}]} {
    %c0_i32 = arith.constant 0 : i32
    %0 = arith.cmpi eq, %arg1, %c0_i32 : i32
    %1 = arith.extui %0 : i1 to i32
    %c0_i32_0 = arith.constant 0 : i32
    %2 = arith.cmpi ne, %1, %c0_i32_0 : i32
    scf.if %2 {
      %cst_34 = arith.constant 0.000000e+00 : f32
      %66 = vector.broadcast %cst_34 : f32 to vector<16x6xf32>
      %c0_35 = arith.constant 0 : index
      %c0_36 = arith.constant 0 : index
      %67 = vector.load %arg12[%c0_35, %c0_36] : memref<16x6xf32, #tpu.memory_space<vmem>>, vector<16x6xf32>
      tpu.vector_store %arg12[%c0_35, %c0_36], %66 {strides = array<i32>} : memref<16x6xf32, #tpu.memory_space<vmem>>, vector<16x6xf32>,
    } else {
    }
    %c0 = arith.constant 0 : index
    %c0_1 = arith.constant 0 : index
    %c0_2 = arith.constant 0 : index
    %c0_3 = arith.constant 0 : index
    %3 = vector.load %arg2[%c0, %c0_1, %c0_2, %c0_3] : memref<1x1x16x16xf32, #tpu.memory_space<vmem>>, vector<1x1x16x16xf32>
    %4 = vector.shape_cast %3 : vector<1x1x16x16xf32> to vector<16x16xf32>
    %5 = tpu.iota {dimensions = array<i32: 0>} : vector<16x16xi32>
    %6 = tpu.iota {dimensions = array<i32: 1>} : vector<16x16xi32>
    %7 = arith.cmpi eq, %5, %6 : vector<16x16xi32>
    %cst = arith.constant 1.000000e+00 : f32
    %8 = vector.broadcast %cst : f32 to vector<16x16xf32>
    %9 = arith.select %7, %8, %4 : vector<16x16xi1>, vector<16x16xf32>
    %cst_4 = arith.constant dense<0.000000e+00> : vector<16xf32>
    %10 = vector.multi_reduction <add>, %9, %cst_4 [1] : vector<16x16xf32> to vector<16xf32>
    %11 = vector.shape_cast %10 : vector<16xf32> to vector<16x1xf32>
    %cst_5 = arith.constant 1.000000e+00 : f32
    %12 = vector.broadcast %cst_5 : f32 to vector<16x1xf32>
    %13 = arith.maximumf %11, %12 : vector<16x1xf32>
    %cst_6 = arith.constant dense<0.000000e+00> : vector<16xf32>
    %14 = vector.multi_reduction <add>, %9, %cst_6 [0] : vector<16x16xf32> to vector<16xf32>
    %15 = vector.shape_cast %14 : vector<16xf32> to vector<1x16xf32>
    %cst_7 = arith.constant 1.000000e+00 : f32
    %16 = vector.broadcast %cst_7 : f32 to vector<1x16xf32>
    %17 = arith.maximumf %15, %16 : vector<1x16xf32>
    %18 = math.rsqrt %13 : vector<16x1xf32>
    %19 = vector.broadcast %18 : vector<16x1xf32> to vector<16x16xf32>
    %20 = arith.mulf %19, %9 : vector<16x16xf32>
    %21 = math.rsqrt %17 : vector<1x16xf32>
    %22 = vector.broadcast %21 : vector<1x16xf32> to vector<16x16xf32>
    %23 = arith.mulf %20, %22 : vector<16x16xf32>
    %24 = arith.truncf %23 : vector<16x16xf32> to vector<16x16xbf16>
    %c0_8 = arith.constant 0 : index
    %c0_9 = arith.constant 0 : index
    %c0_10 = arith.constant 0 : index
    %c0_11 = arith.constant 0 : index
    %25 = vector.load %arg3[%c0_8, %c0_9, %c0_10, %c0_11] : memref<1x1x16x40xbf16, #tpu.memory_space<vmem>>, vector<1x1x16x40xbf16>
    %26 = vector.shape_cast %25 : vector<1x1x16x40xbf16> to vector<16x40xbf16>
    %cst_12 = arith.constant dense<0.000000e+00> : vector<16x40xf32>
    %27 = tpu.matmul %24, %26, %cst_12 {dimension_numbers = #tpu.dot_dimension_numbers<[1], [0], [0], [1], [0, 0, 1, 1], [], []>} : vector<16x16xbf16>, vector<16x40xbf16>, vector<16x40xf32> -> vector<16x40xf32>
    %c0_13 = arith.constant 0 : index
    %c0_14 = arith.constant 0 : index
    %c0_15 = arith.constant 0 : index
    %28 = vector.load %arg4[%c0_13, %c0_14, %c0_15] : memref<1x1x40xf32, #tpu.memory_space<vmem>>, vector<1x1x40xf32>
    %29 = vector.shape_cast %28 : vector<1x1x40xf32> to vector<1x40xf32>
    %30 = vector.broadcast %29 : vector<1x40xf32> to vector<16x40xf32>
    %31 = arith.addf %27, %30 : vector<16x40xf32>
    %32 = vector.extract_strided_slice %31 {offsets = [0, 0], sizes = [16, 16], strides = [1, 1]} : vector<16x40xf32> to vector<16x16xf32>
    %33 = vector.shape_cast %32 : vector<16x16xf32> to vector<16x4x4xf32>
    %34 = tpu.transpose %33, [1, 0, 2] : vector<16x4x4xf32> -> vector<4x16x4xf32>
    %35 = arith.truncf %34 : vector<4x16x4xf32> to vector<4x16x4xbf16>
    %36 = vector.extract_strided_slice %31 {offsets = [0, 16], sizes = [16, 16], strides = [1, 1]} : vector<16x40xf32> to vector<16x16xf32>
    %37 = vector.shape_cast %36 : vector<16x16xf32> to vector<16x4x4xf32>
    %38 = tpu.transpose %37, [1, 0, 2] : vector<16x4x4xf32> -> vector<4x16x4xf32>
    %39 = arith.truncf %38 : vector<4x16x4xf32> to vector<4x16x4xbf16>
    "tpu.trace_start"() <{level = 10 : i32, message = "hnd,hmd->hnm"}> : () -> ()
    %cst_16 = arith.constant dense<0.000000e+00> : vector<4x16x16xf32>
    %40 = tpu.matmul %35, %39, %cst_16 {dimension_numbers = #tpu.dot_dimension_numbers<[2], [2], [1], [1], [0, 0, 0, 1, 1, 1], [0], [0]>} : vector<4x16x4xbf16>, vector<4x16x4xbf16>, vector<4x16x16xf32> -> vector<4x16x16xf32>
    "tpu.trace_stop"() : () -> ()
    %cst_17 = arith.constant 0.353553385 : f32
    %41 = vector.broadcast %cst_17 : f32 to vector<4x16x16xf32>
    %42 = arith.mulf %40, %41 : vector<4x16x16xf32>
    %43 = math.tanh %42 : vector<4x16x16xf32>
    %cst_18 = arith.constant dense<0.000000e+00> : vector<16x16xf32>
    %44 = vector.multi_reduction <add>, %43, %cst_18 [0] : vector<4x16x16xf32> to vector<16x16xf32>
    %cst_19 = arith.constant 2.500000e-01 : f32
    %45 = vector.broadcast %cst_19 : f32 to vector<16x16xf32>
    %46 = arith.mulf %44, %45 : vector<16x16xf32>
    %47 = tpu.transpose %46, [1, 0] : vector<16x16xf32> -> vector<16x16xf32>
    %48 = arith.addf %46, %47 : vector<16x16xf32>
    %cst_20 = arith.constant 5.000000e-01 : f32
    %49 = vector.broadcast %cst_20 : f32 to vector<16x16xf32>
    %50 = arith.mulf %49, %48 : vector<16x16xf32>
    %51 = arith.truncf %50 : vector<16x16xf32> to vector<16x16xbf16>
    %c0_21 = arith.constant 0 : index
    %c0_22 = arith.constant 0 : index
    %c0_23 = arith.constant 0 : index
    %c0_24 = arith.constant 0 : index
    %52 = vector.load %arg10[%c0_21, %c0_22, %c0_23, %c0_24] : memref<1x1x16x16xbf16, #tpu.memory_space<vmem>>, vector<1x1x16x16xbf16>
    %53 = vector.shape_cast %52 : vector<1x1x16x16xbf16> to vector<16x16xbf16>
    %54 = vector.shape_cast %51 : vector<16x16xbf16> to vector<1x1x16x16xbf16>
    tpu.vector_store %arg10[%c0_21, %c0_22, %c0_23, %c0_24], %54 {strides = array<i32>} : memref<1x1x16x16xbf16, #tpu.memory_space<vmem>>, vector<1x1x16x16xbf16>,
    %55 = vector.extract_strided_slice %31 {offsets = [0, 32], sizes = [16, 8], strides = [1, 1]} : vector<16x40xf32> to vector<16x8xf32>
    %56 = arith.truncf %55 : vector<16x8xf32> to vector<16x8xbf16>
    %c0_25 = arith.constant 0 : index
    %c0_26 = arith.constant 0 : index
    %57 = vector.load %arg12[%c0_25, %c0_26] : memref<16x6xf32, #tpu.memory_space<vmem>>, vector<16x6xf32>
    %c0_27 = arith.constant 0 : index
    %c0_28 = arith.constant 0 : index
    %c0_29 = arith.constant 0 : index
    %58 = vector.load %arg6[%c0_27, %c0_28, %c0_29] : memref<1x8x6xbf16, #tpu.memory_space<vmem>>, vector<1x8x6xbf16>
    %59 = vector.shape_cast %58 : vector<1x8x6xbf16> to vector<8x6xbf16>
    %cst_30 = arith.constant dense<0.000000e+00> : vector<16x6xf32>
    %60 = tpu.matmul %56, %59, %cst_30 {dimension_numbers = #tpu.dot_dimension_numbers<[1], [0], [0], [1], [0, 0, 1, 1], [], []>} : vector<16x8xbf16>, vector<8x6xbf16>, vector<16x6xf32> -> vector<16x6xf32>
    %61 = arith.addf %57, %60 : vector<16x6xf32>
    %c0_31 = arith.constant 0 : index
    %c0_32 = arith.constant 0 : index
    %62 = vector.load %arg12[%c0_31, %c0_32] : memref<16x6xf32, #tpu.memory_space<vmem>>, vector<16x6xf32>
    tpu.vector_store %arg12[%c0_31, %c0_32], %61 {strides = array<i32>} : memref<16x6xf32, #tpu.memory_space<vmem>>, vector<16x6xf32>,
    %c1_i32 = arith.constant 1 : i32
    %63 = arith.cmpi eq, %arg1, %c1_i32 : i32
    %64 = arith.extui %63 : i1 to i32
    %c0_i32_33 = arith.constant 0 : i32
    %65 = arith.cmpi ne, %64, %c0_i32_33 : i32
    scf.if %65 {
      %c0_34 = arith.constant 0 : index
      %c0_35 = arith.constant 0 : index
      %66 = vector.load %arg12[%c0_34, %c0_35] : memref<16x6xf32, #tpu.memory_space<vmem>>, vector<16x6xf32>
      %c0_36 = arith.constant 0 : index
      %c0_37 = arith.constant 0 : index
      %67 = vector.load %arg7[%c0_36, %c0_37] : memref<1x6xf32, #tpu.memory_space<vmem>>, vector<1x6xf32>
      %68 = vector.broadcast %67 : vector<1x6xf32> to vector<16x6xf32>
      %69 = arith.addf %66, %68 : vector<16x6xf32>
      %cst_38 = arith.constant 0.000000e+00 : f32
      %70 = vector.broadcast %cst_38 : f32 to vector<16x6xf32>
      %71 = arith.cmpf ogt, %69, %70 : vector<16x6xf32>
      %cst_39 = arith.constant 0.000000e+00 : f32
      %72 = vector.broadcast %cst_39 : f32 to vector<16x6xf32>
      %73 = arith.minimumf %69, %72 : vector<16x6xf32>
      %74 = math.exp %73 : vector<16x6xf32>
      %cst_40 = arith.constant 1.000000e+00 : f32
      %75 = vector.broadcast %cst_40 : f32 to vector<16x6xf32>
      %76 = arith.subf %74, %75 : vector<16x6xf32>
      %77 = arith.select %71, %69, %76 : vector<16x6xi1>, vector<16x6xf32>
      %c0_41 = arith.constant 0 : index
      %c0_42 = arith.constant 0 : index
      %78 = vector.load %arg8[%c0_41, %c0_42] : memref<6x8xf32, #tpu.memory_space<vmem>>, vector<6x8xf32>
      %cst_43 = arith.constant dense<0.000000e+00> : vector<16x8xf32>
      %79 = tpu.matmul %77, %78, %cst_43 {dimension_numbers = #tpu.dot_dimension_numbers<[1], [0], [0], [1], [0, 0, 1, 1], [], []>} : vector<16x6xf32>, vector<6x8xf32>, vector<16x8xf32> -> vector<16x8xf32>
      %c0_44 = arith.constant 0 : index
      %c0_45 = arith.constant 0 : index
      %80 = vector.load %arg9[%c0_44, %c0_45] : memref<1x8xf32, #tpu.memory_space<vmem>>, vector<1x8xf32>
      %81 = vector.broadcast %80 : vector<1x8xf32> to vector<16x8xf32>
      %82 = arith.addf %79, %81 : vector<16x8xf32>
      %c0_46 = arith.constant 0 : index
      %c0_47 = arith.constant 0 : index
      %c0_48 = arith.constant 0 : index
      %83 = vector.load %arg5[%c0_46, %c0_47, %c0_48] : memref<1x16x1xf32, #tpu.memory_space<vmem>>, vector<1x16x1xf32>
      %84 = vector.shape_cast %83 : vector<1x16x1xf32> to vector<16x1xf32>
      %85 = vector.broadcast %84 : vector<16x1xf32> to vector<16x8xf32>
      %86 = arith.mulf %82, %85 : vector<16x8xf32>
      %87 = math.tanh %86 : vector<16x8xf32>
      %c0_49 = arith.constant 0 : index
      %c0_50 = arith.constant 0 : index
      %c0_51 = arith.constant 0 : index
      %88 = vector.load %arg11[%c0_49, %c0_50, %c0_51] : memref<1x16x8xf32, #tpu.memory_space<vmem>>, vector<1x16x8xf32>
      %89 = vector.shape_cast %88 : vector<1x16x8xf32> to vector<16x8xf32>
      %90 = vector.shape_cast %87 : vector<16x8xf32> to vector<1x16x8xf32>
      tpu.vector_store %arg11[%c0_49, %c0_50, %c0_51], %90 {strides = array<i32>} : memref<1x16x8xf32, #tpu.memory_space<vmem>>, vector<1x16x8xf32>,
    } else {
    }
    return
  }
  func.func @transform_0(%arg0: i32, %arg1: i32) -> (i32, i32, i32, i32) {
    %c0_i32 = arith.constant 0 : i32
    %c0_i32_0 = arith.constant 0 : i32
    %c0_i32_1 = arith.constant 0 : i32
    return %arg0, %arg1, %c0_i32, %c0_i32_0 : i32, i32, i32, i32
  }
  func.func @transform_1(%arg0: i32, %arg1: i32) -> (i32, i32, i32, i32) {
    %c0_i32 = arith.constant 0 : i32
    %c0_i32_0 = arith.constant 0 : i32
    %c0_i32_1 = arith.constant 0 : i32
    return %arg1, %arg0, %c0_i32, %c0_i32_0 : i32, i32, i32, i32
  }
  func.func @transform_2(%arg0: i32, %arg1: i32) -> (i32, i32, i32) {
    %c0_i32 = arith.constant 0 : i32
    %c0_i32_0 = arith.constant 0 : i32
    %c0_i32_1 = arith.constant 0 : i32
    return %arg1, %c0_i32, %c0_i32_0 : i32, i32, i32
  }
  func.func @transform_3(%arg0: i32, %arg1: i32) -> (i32, i32, i32) {
    %c0_i32 = arith.constant 0 : i32
    %c0_i32_0 = arith.constant 0 : i32
    %c0_i32_1 = arith.constant 0 : i32
    return %arg0, %c0_i32, %c0_i32_0 : i32, i32, i32
  }
  func.func @transform_4(%arg0: i32, %arg1: i32) -> (i32, i32, i32) {
    %c0_i32 = arith.constant 0 : i32
    %c0_i32_0 = arith.constant 0 : i32
    %c0_i32_1 = arith.constant 0 : i32
    return %arg1, %c0_i32, %c0_i32_0 : i32, i32, i32
  }
  func.func @transform_5(%arg0: i32, %arg1: i32) -> (i32, i32) {
    %c0_i32 = arith.constant 0 : i32
    %c0_i32_0 = arith.constant 0 : i32
    %c0_i32_1 = arith.constant 0 : i32
    return %c0_i32, %c0_i32_0 : i32, i32
  }
  func.func @transform_6(%arg0: i32, %arg1: i32) -> (i32, i32) {
    %c0_i32 = arith.constant 0 : i32
    %c0_i32_0 = arith.constant 0 : i32
    %c0_i32_1 = arith.constant 0 : i32
    return %c0_i32, %c0_i32_0 : i32, i32
  }
  func.func @transform_7(%arg0: i32, %arg1: i32) -> (i32, i32) {
    %c0_i32 = arith.constant 0 : i32
    %c0_i32_0 = arith.constant 0 : i32
    %c0_i32_1 = arith.constant 0 : i32
    return %c0_i32, %c0_i32_0 : i32, i32
  }
  func.func @transform_8(%arg0: i32, %arg1: i32) -> (i32, i32, i32, i32) {
    %c0_i32 = arith.constant 0 : i32
    %c0_i32_0 = arith.constant 0 : i32
    %c0_i32_1 = arith.constant 0 : i32
    return %arg1, %arg0, %c0_i32, %c0_i32_0 : i32, i32, i32, i32
  }
  func.func @transform_9(%arg0: i32, %arg1: i32) -> (i32, i32, i32) {
    %c0_i32 = arith.constant 0 : i32
    %c0_i32_0 = arith.constant 0 : i32
    %c0_i32_1 = arith.constant 0 : i32
    return %arg0, %c0_i32, %c0_i32_0 : i32, i32, i32
  }
}

module attributes {stable_mosaic.version = 11 : i64} {
  func.func @_edge_mlp_kernel(%arg0: i32, %arg1: memref<2x1x16x16xbf16, #tpu.memory_space<vmem>>, %arg2: memref<1x2x16x16xf32, #tpu.memory_space<vmem>>, %arg3: memref<1x1x16xf32, #tpu.memory_space<vmem>>, %arg4: memref<4x6xf32, #tpu.memory_space<smem>>, %arg5: memref<6xf32, #tpu.memory_space<smem>>, %arg6: memref<6x3xf32, #tpu.memory_space<smem>>, %arg7: memref<3xf32, #tpu.memory_space<smem>>, %arg8: memref<1x3x16x16xf32, #tpu.memory_space<vmem>>) attributes {dimension_semantics = [#tpu.dimension_semantics<parallel>], iteration_bounds = array<i64: 2>, scalar_prefetch = 0 : i64, scratch_operands = 0 : i64, tpu.core_type = #tpu.core_type<tc>, window_params = [{transform_indices = @transform_0, window_bounds = array<i64: 2, 1, 16, 16>}, {transform_indices = @transform_1, window_bounds = array<i64: 1, 2, 16, 16>}, {transform_indices = @transform_2, window_bounds = array<i64: 1, 1, 16>}, {transform_indices = @transform_3, window_bounds = array<i64: 4, 6>}, {transform_indices = @transform_4, window_bounds = array<i64: 6>}, {transform_indices = @transform_5, window_bounds = array<i64: 6, 3>}, {transform_indices = @transform_6, window_bounds = array<i64: 3>}, {transform_indices = @transform_7, window_bounds = array<i64: 1, 3, 16, 16>}]} {
    %c0 = arith.constant 0 : index
    %c0_0 = arith.constant 0 : index
    %c0_1 = arith.constant 0 : index
    %0 = vector.load %arg3[%c0, %c0_0, %c0_1] : memref<1x1x16xf32, #tpu.memory_space<vmem>>, vector<1x1x16xf32>
    %1 = vector.shape_cast %0 : vector<1x1x16xf32> to vector<1x16xf32>
    %2 = tpu.transpose %1, [1, 0] : vector<1x16xf32> -> vector<16x1xf32>
    %3 = vector.broadcast %2 : vector<16x1xf32> to vector<16x16xf32>
    %4 = vector.broadcast %1 : vector<1x16xf32> to vector<16x16xf32>
    %5 = arith.mulf %3, %4 : vector<16x16xf32>
    %cst = arith.constant 0.000000e+00 : f32
    %6 = vector.broadcast %cst : f32 to vector<16x16xf32>
    %c0_2 = arith.constant 0 : index
    %7 = memref.load %arg7[%c0_2] : memref<3xf32, #tpu.memory_space<smem>>
    %8 = vector.broadcast %7 : f32 to vector<16x16xf32>
    %9 = arith.addf %6, %8 : vector<16x16xf32>
    %c1 = arith.constant 1 : index
    %10 = memref.load %arg7[%c1] : memref<3xf32, #tpu.memory_space<smem>>
    %11 = vector.broadcast %10 : f32 to vector<16x16xf32>
    %12 = arith.addf %6, %11 : vector<16x16xf32>
    %c2 = arith.constant 2 : index
    %13 = memref.load %arg7[%c2] : memref<3xf32, #tpu.memory_space<smem>>
    %14 = vector.broadcast %13 : f32 to vector<16x16xf32>
    %15 = arith.addf %6, %14 : vector<16x16xf32>
    %c0_3 = arith.constant 0 : index
    %16 = memref.load %arg5[%c0_3] : memref<6xf32, #tpu.memory_space<smem>>
    %17 = vector.broadcast %16 : f32 to vector<16x16xf32>
    %18 = arith.addf %6, %17 : vector<16x16xf32>
    %c0_4 = arith.constant 0 : index
    %c0_5 = arith.constant 0 : index
    %19 = memref.load %arg4[%c0_4, %c0_5] : memref<4x6xf32, #tpu.memory_space<smem>>
    %c0_6 = arith.constant 0 : index
    %c0_7 = arith.constant 0 : index
    %c0_8 = arith.constant 0 : index
    %c0_9 = arith.constant 0 : index
    %20 = vector.load %arg1[%c0_6, %c0_7, %c0_8, %c0_9] : memref<2x1x16x16xbf16, #tpu.memory_space<vmem>>, vector<1x1x16x16xbf16>
    %21 = vector.shape_cast %20 : vector<1x1x16x16xbf16> to vector<16x16xbf16>
    %22 = arith.extf %21 : vector<16x16xbf16> to vector<16x16xf32>
    %23 = vector.broadcast %19 : f32 to vector<16x16xf32>
    %24 = arith.mulf %23, %22 : vector<16x16xf32>
    %25 = arith.addf %18, %24 : vector<16x16xf32>
    %c1_10 = arith.constant 1 : index
    %c0_11 = arith.constant 0 : index
    %26 = memref.load %arg4[%c1_10, %c0_11] : memref<4x6xf32, #tpu.memory_space<smem>>
    %c1_12 = arith.constant 1 : index
    %c0_13 = arith.constant 0 : index
    %c0_14 = arith.constant 0 : index
    %c0_15 = arith.constant 0 : index
    %27 = vector.load %arg1[%c1_12, %c0_13, %c0_14, %c0_15] : memref<2x1x16x16xbf16, #tpu.memory_space<vmem>>, vector<1x1x16x16xbf16>
    %28 = vector.shape_cast %27 : vector<1x1x16x16xbf16> to vector<16x16xbf16>
    %29 = arith.extf %28 : vector<16x16xbf16> to vector<16x16xf32>
    %30 = vector.broadcast %26 : f32 to vector<16x16xf32>
    %31 = arith.mulf %30, %29 : vector<16x16xf32>
    %32 = arith.addf %25, %31 : vector<16x16xf32>
    %c2_16 = arith.constant 2 : index
    %c0_17 = arith.constant 0 : index
    %33 = memref.load %arg4[%c2_16, %c0_17] : memref<4x6xf32, #tpu.memory_space<smem>>
    %c0_18 = arith.constant 0 : index
    %c0_19 = arith.constant 0 : index
    %c0_20 = arith.constant 0 : index
    %c0_21 = arith.constant 0 : index
    %34 = vector.load %arg2[%c0_18, %c0_19, %c0_20, %c0_21] : memref<1x2x16x16xf32, #tpu.memory_space<vmem>>, vector<1x1x16x16xf32>
    %35 = vector.shape_cast %34 : vector<1x1x16x16xf32> to vector<16x16xf32>
    %36 = vector.broadcast %33 : f32 to vector<16x16xf32>
    %37 = arith.mulf %36, %35 : vector<16x16xf32>
    %38 = arith.addf %32, %37 : vector<16x16xf32>
    %c3 = arith.constant 3 : index
    %c0_22 = arith.constant 0 : index
    %39 = memref.load %arg4[%c3, %c0_22] : memref<4x6xf32, #tpu.memory_space<smem>>
    %c0_23 = arith.constant 0 : index
    %c1_24 = arith.constant 1 : index
    %c0_25 = arith.constant 0 : index
    %c0_26 = arith.constant 0 : index
    %40 = vector.load %arg2[%c0_23, %c1_24, %c0_25, %c0_26] : memref<1x2x16x16xf32, #tpu.memory_space<vmem>>, vector<1x1x16x16xf32>
    %41 = vector.shape_cast %40 : vector<1x1x16x16xf32> to vector<16x16xf32>
    %42 = vector.broadcast %39 : f32 to vector<16x16xf32>
    %43 = arith.mulf %42, %41 : vector<16x16xf32>
    %44 = arith.addf %38, %43 : vector<16x16xf32>
    %cst_27 = arith.constant 0.000000e+00 : f32
    %45 = vector.broadcast %cst_27 : f32 to vector<16x16xf32>
    %46 = arith.cmpf ogt, %44, %45 : vector<16x16xf32>
    %cst_28 = arith.constant 0.000000e+00 : f32
    %47 = vector.broadcast %cst_28 : f32 to vector<16x16xf32>
    %48 = arith.minimumf %44, %47 : vector<16x16xf32>
    %49 = math.exp %48 : vector<16x16xf32>
    %cst_29 = arith.constant 1.000000e+00 : f32
    %50 = vector.broadcast %cst_29 : f32 to vector<16x16xf32>
    %51 = arith.subf %49, %50 : vector<16x16xf32>
    %52 = arith.select %46, %44, %51 : vector<16x16xi1>, vector<16x16xf32>
    %c0_30 = arith.constant 0 : index
    %c0_31 = arith.constant 0 : index
    %53 = memref.load %arg6[%c0_30, %c0_31] : memref<6x3xf32, #tpu.memory_space<smem>>
    %54 = vector.broadcast %53 : f32 to vector<16x16xf32>
    %55 = arith.mulf %54, %52 : vector<16x16xf32>
    %56 = arith.addf %9, %55 : vector<16x16xf32>
    %c0_32 = arith.constant 0 : index
    %c1_33 = arith.constant 1 : index
    %57 = memref.load %arg6[%c0_32, %c1_33] : memref<6x3xf32, #tpu.memory_space<smem>>
    %58 = vector.broadcast %57 : f32 to vector<16x16xf32>
    %59 = arith.mulf %58, %52 : vector<16x16xf32>
    %60 = arith.addf %12, %59 : vector<16x16xf32>
    %c0_34 = arith.constant 0 : index
    %c2_35 = arith.constant 2 : index
    %61 = memref.load %arg6[%c0_34, %c2_35] : memref<6x3xf32, #tpu.memory_space<smem>>
    %62 = vector.broadcast %61 : f32 to vector<16x16xf32>
    %63 = arith.mulf %62, %52 : vector<16x16xf32>
    %64 = arith.addf %15, %63 : vector<16x16xf32>
    %c1_36 = arith.constant 1 : index
    %65 = memref.load %arg5[%c1_36] : memref<6xf32, #tpu.memory_space<smem>>
    %66 = vector.broadcast %65 : f32 to vector<16x16xf32>
    %67 = arith.addf %6, %66 : vector<16x16xf32>
    %c0_37 = arith.constant 0 : index
    %c1_38 = arith.constant 1 : index
    %68 = memref.load %arg4[%c0_37, %c1_38] : memref<4x6xf32, #tpu.memory_space<smem>>
    %c0_39 = arith.constant 0 : index
    %c0_40 = arith.constant 0 : index
    %c0_41 = arith.constant 0 : index
    %c0_42 = arith.constant 0 : index
    %69 = vector.load %arg1[%c0_39, %c0_40, %c0_41, %c0_42] : memref<2x1x16x16xbf16, #tpu.memory_space<vmem>>, vector<1x1x16x16xbf16>
    %70 = vector.shape_cast %69 : vector<1x1x16x16xbf16> to vector<16x16xbf16>
    %71 = arith.extf %70 : vector<16x16xbf16> to vector<16x16xf32>
    %72 = vector.broadcast %68 : f32 to vector<16x16xf32>
    %73 = arith.mulf %72, %71 : vector<16x16xf32>
    %74 = arith.addf %67, %73 : vector<16x16xf32>
    %c1_43 = arith.constant 1 : index
    %c1_44 = arith.constant 1 : index
    %75 = memref.load %arg4[%c1_43, %c1_44] : memref<4x6xf32, #tpu.memory_space<smem>>
    %c1_45 = arith.constant 1 : index
    %c0_46 = arith.constant 0 : index
    %c0_47 = arith.constant 0 : index
    %c0_48 = arith.constant 0 : index
    %76 = vector.load %arg1[%c1_45, %c0_46, %c0_47, %c0_48] : memref<2x1x16x16xbf16, #tpu.memory_space<vmem>>, vector<1x1x16x16xbf16>
    %77 = vector.shape_cast %76 : vector<1x1x16x16xbf16> to vector<16x16xbf16>
    %78 = arith.extf %77 : vector<16x16xbf16> to vector<16x16xf32>
    %79 = vector.broadcast %75 : f32 to vector<16x16xf32>
    %80 = arith.mulf %79, %78 : vector<16x16xf32>
    %81 = arith.addf %74, %80 : vector<16x16xf32>
    %c2_49 = arith.constant 2 : index
    %c1_50 = arith.constant 1 : index
    %82 = memref.load %arg4[%c2_49, %c1_50] : memref<4x6xf32, #tpu.memory_space<smem>>
    %c0_51 = arith.constant 0 : index
    %c0_52 = arith.constant 0 : index
    %c0_53 = arith.constant 0 : index
    %c0_54 = arith.constant 0 : index
    %83 = vector.load %arg2[%c0_51, %c0_52, %c0_53, %c0_54] : memref<1x2x16x16xf32, #tpu.memory_space<vmem>>, vector<1x1x16x16xf32>
    %84 = vector.shape_cast %83 : vector<1x1x16x16xf32> to vector<16x16xf32>
    %85 = vector.broadcast %82 : f32 to vector<16x16xf32>
    %86 = arith.mulf %85, %84 : vector<16x16xf32>
    %87 = arith.addf %81, %86 : vector<16x16xf32>
    %c3_55 = arith.constant 3 : index
    %c1_56 = arith.constant 1 : index
    %88 = memref.load %arg4[%c3_55, %c1_56] : memref<4x6xf32, #tpu.memory_space<smem>>
    %c0_57 = arith.constant 0 : index
    %c1_58 = arith.constant 1 : index
    %c0_59 = arith.constant 0 : index
    %c0_60 = arith.constant 0 : index
    %89 = vector.load %arg2[%c0_57, %c1_58, %c0_59, %c0_60] : memref<1x2x16x16xf32, #tpu.memory_space<vmem>>, vector<1x1x16x16xf32>
    %90 = vector.shape_cast %89 : vector<1x1x16x16xf32> to vector<16x16xf32>
    %91 = vector.broadcast %88 : f32 to vector<16x16xf32>
    %92 = arith.mulf %91, %90 : vector<16x16xf32>
    %93 = arith.addf %87, %92 : vector<16x16xf32>
    %cst_61 = arith.constant 0.000000e+00 : f32
    %94 = vector.broadcast %cst_61 : f32 to vector<16x16xf32>
    %95 = arith.cmpf ogt, %93, %94 : vector<16x16xf32>
    %cst_62 = arith.constant 0.000000e+00 : f32
    %96 = vector.broadcast %cst_62 : f32 to vector<16x16xf32>
    %97 = arith.minimumf %93, %96 : vector<16x16xf32>
    %98 = math.exp %97 : vector<16x16xf32>
    %cst_63 = arith.constant 1.000000e+00 : f32
    %99 = vector.broadcast %cst_63 : f32 to vector<16x16xf32>
    %100 = arith.subf %98, %99 : vector<16x16xf32>
    %101 = arith.select %95, %93, %100 : vector<16x16xi1>, vector<16x16xf32>
    %c1_64 = arith.constant 1 : index
    %c0_65 = arith.constant 0 : index
    %102 = memref.load %arg6[%c1_64, %c0_65] : memref<6x3xf32, #tpu.memory_space<smem>>
    %103 = vector.broadcast %102 : f32 to vector<16x16xf32>
    %104 = arith.mulf %103, %101 : vector<16x16xf32>
    %105 = arith.addf %56, %104 : vector<16x16xf32>
    %c1_66 = arith.constant 1 : index
    %c1_67 = arith.constant 1 : index
    %106 = memref.load %arg6[%c1_66, %c1_67] : memref<6x3xf32, #tpu.memory_space<smem>>
    %107 = vector.broadcast %106 : f32 to vector<16x16xf32>
    %108 = arith.mulf %107, %101 : vector<16x16xf32>
    %109 = arith.addf %60, %108 : vector<16x16xf32>
    %c1_68 = arith.constant 1 : index
    %c2_69 = arith.constant 2 : index
    %110 = memref.load %arg6[%c1_68, %c2_69] : memref<6x3xf32, #tpu.memory_space<smem>>
    %111 = vector.broadcast %110 : f32 to vector<16x16xf32>
    %112 = arith.mulf %111, %101 : vector<16x16xf32>
    %113 = arith.addf %64, %112 : vector<16x16xf32>
    %c2_70 = arith.constant 2 : index
    %114 = memref.load %arg5[%c2_70] : memref<6xf32, #tpu.memory_space<smem>>
    %115 = vector.broadcast %114 : f32 to vector<16x16xf32>
    %116 = arith.addf %6, %115 : vector<16x16xf32>
    %c0_71 = arith.constant 0 : index
    %c2_72 = arith.constant 2 : index
    %117 = memref.load %arg4[%c0_71, %c2_72] : memref<4x6xf32, #tpu.memory_space<smem>>
    %c0_73 = arith.constant 0 : index
    %c0_74 = arith.constant 0 : index
    %c0_75 = arith.constant 0 : index
    %c0_76 = arith.constant 0 : index
    %118 = vector.load %arg1[%c0_73, %c0_74, %c0_75, %c0_76] : memref<2x1x16x16xbf16, #tpu.memory_space<vmem>>, vector<1x1x16x16xbf16>
    %119 = vector.shape_cast %118 : vector<1x1x16x16xbf16> to vector<16x16xbf16>
    %120 = arith.extf %119 : vector<16x16xbf16> to vector<16x16xf32>
    %121 = vector.broadcast %117 : f32 to vector<16x16xf32>
    %122 = arith.mulf %121, %120 : vector<16x16xf32>
    %123 = arith.addf %116, %122 : vector<16x16xf32>
    %c1_77 = arith.constant 1 : index
    %c2_78 = arith.constant 2 : index
    %124 = memref.load %arg4[%c1_77, %c2_78] : memref<4x6xf32, #tpu.memory_space<smem>>
    %c1_79 = arith.constant 1 : index
    %c0_80 = arith.constant 0 : index
    %c0_81 = arith.constant 0 : index
    %c0_82 = arith.constant 0 : index
    %125 = vector.load %arg1[%c1_79, %c0_80, %c0_81, %c0_82] : memref<2x1x16x16xbf16, #tpu.memory_space<vmem>>, vector<1x1x16x16xbf16>
    %126 = vector.shape_cast %125 : vector<1x1x16x16xbf16> to vector<16x16xbf16>
    %127 = arith.extf %126 : vector<16x16xbf16> to vector<16x16xf32>
    %128 = vector.broadcast %124 : f32 to vector<16x16xf32>
    %129 = arith.mulf %128, %127 : vector<16x16xf32>
    %130 = arith.addf %123, %129 : vector<16x16xf32>
    %c2_83 = arith.constant 2 : index
    %c2_84 = arith.constant 2 : index
    %131 = memref.load %arg4[%c2_83, %c2_84] : memref<4x6xf32, #tpu.memory_space<smem>>
    %c0_85 = arith.constant 0 : index
    %c0_86 = arith.constant 0 : index
    %c0_87 = arith.constant 0 : index
    %c0_88 = arith.constant 0 : index
    %132 = vector.load %arg2[%c0_85, %c0_86, %c0_87, %c0_88] : memref<1x2x16x16xf32, #tpu.memory_space<vmem>>, vector<1x1x16x16xf32>
    %133 = vector.shape_cast %132 : vector<1x1x16x16xf32> to vector<16x16xf32>
    %134 = vector.broadcast %131 : f32 to vector<16x16xf32>
    %135 = arith.mulf %134, %133 : vector<16x16xf32>
    %136 = arith.addf %130, %135 : vector<16x16xf32>
    %c3_89 = arith.constant 3 : index
    %c2_90 = arith.constant 2 : index
    %137 = memref.load %arg4[%c3_89, %c2_90] : memref<4x6xf32, #tpu.memory_space<smem>>
    %c0_91 = arith.constant 0 : index
    %c1_92 = arith.constant 1 : index
    %c0_93 = arith.constant 0 : index
    %c0_94 = arith.constant 0 : index
    %138 = vector.load %arg2[%c0_91, %c1_92, %c0_93, %c0_94] : memref<1x2x16x16xf32, #tpu.memory_space<vmem>>, vector<1x1x16x16xf32>
    %139 = vector.shape_cast %138 : vector<1x1x16x16xf32> to vector<16x16xf32>
    %140 = vector.broadcast %137 : f32 to vector<16x16xf32>
    %141 = arith.mulf %140, %139 : vector<16x16xf32>
    %142 = arith.addf %136, %141 : vector<16x16xf32>
    %cst_95 = arith.constant 0.000000e+00 : f32
    %143 = vector.broadcast %cst_95 : f32 to vector<16x16xf32>
    %144 = arith.cmpf ogt, %142, %143 : vector<16x16xf32>
    %cst_96 = arith.constant 0.000000e+00 : f32
    %145 = vector.broadcast %cst_96 : f32 to vector<16x16xf32>
    %146 = arith.minimumf %142, %145 : vector<16x16xf32>
    %147 = math.exp %146 : vector<16x16xf32>
    %cst_97 = arith.constant 1.000000e+00 : f32
    %148 = vector.broadcast %cst_97 : f32 to vector<16x16xf32>
    %149 = arith.subf %147, %148 : vector<16x16xf32>
    %150 = arith.select %144, %142, %149 : vector<16x16xi1>, vector<16x16xf32>
    %c2_98 = arith.constant 2 : index
    %c0_99 = arith.constant 0 : index
    %151 = memref.load %arg6[%c2_98, %c0_99] : memref<6x3xf32, #tpu.memory_space<smem>>
    %152 = vector.broadcast %151 : f32 to vector<16x16xf32>
    %153 = arith.mulf %152, %150 : vector<16x16xf32>
    %154 = arith.addf %105, %153 : vector<16x16xf32>
    %c2_100 = arith.constant 2 : index
    %c1_101 = arith.constant 1 : index
    %155 = memref.load %arg6[%c2_100, %c1_101] : memref<6x3xf32, #tpu.memory_space<smem>>
    %156 = vector.broadcast %155 : f32 to vector<16x16xf32>
    %157 = arith.mulf %156, %150 : vector<16x16xf32>
    %158 = arith.addf %109, %157 : vector<16x16xf32>
    %c2_102 = arith.constant 2 : index
    %c2_103 = arith.constant 2 : index
    %159 = memref.load %arg6[%c2_102, %c2_103] : memref<6x3xf32, #tpu.memory_space<smem>>
    %160 = vector.broadcast %159 : f32 to vector<16x16xf32>
    %161 = arith.mulf %160, %150 : vector<16x16xf32>
    %162 = arith.addf %113, %161 : vector<16x16xf32>
    %c3_104 = arith.constant 3 : index
    %163 = memref.load %arg5[%c3_104] : memref<6xf32, #tpu.memory_space<smem>>
    %164 = vector.broadcast %163 : f32 to vector<16x16xf32>
    %165 = arith.addf %6, %164 : vector<16x16xf32>
    %c0_105 = arith.constant 0 : index
    %c3_106 = arith.constant 3 : index
    %166 = memref.load %arg4[%c0_105, %c3_106] : memref<4x6xf32, #tpu.memory_space<smem>>
    %c0_107 = arith.constant 0 : index
    %c0_108 = arith.constant 0 : index
    %c0_109 = arith.constant 0 : index
    %c0_110 = arith.constant 0 : index
    %167 = vector.load %arg1[%c0_107, %c0_108, %c0_109, %c0_110] : memref<2x1x16x16xbf16, #tpu.memory_space<vmem>>, vector<1x1x16x16xbf16>
    %168 = vector.shape_cast %167 : vector<1x1x16x16xbf16> to vector<16x16xbf16>
    %169 = arith.extf %168 : vector<16x16xbf16> to vector<16x16xf32>
    %170 = vector.broadcast %166 : f32 to vector<16x16xf32>
    %171 = arith.mulf %170, %169 : vector<16x16xf32>
    %172 = arith.addf %165, %171 : vector<16x16xf32>
    %c1_111 = arith.constant 1 : index
    %c3_112 = arith.constant 3 : index
    %173 = memref.load %arg4[%c1_111, %c3_112] : memref<4x6xf32, #tpu.memory_space<smem>>
    %c1_113 = arith.constant 1 : index
    %c0_114 = arith.constant 0 : index
    %c0_115 = arith.constant 0 : index
    %c0_116 = arith.constant 0 : index
    %174 = vector.load %arg1[%c1_113, %c0_114, %c0_115, %c0_116] : memref<2x1x16x16xbf16, #tpu.memory_space<vmem>>, vector<1x1x16x16xbf16>
    %175 = vector.shape_cast %174 : vector<1x1x16x16xbf16> to vector<16x16xbf16>
    %176 = arith.extf %175 : vector<16x16xbf16> to vector<16x16xf32>
    %177 = vector.broadcast %173 : f32 to vector<16x16xf32>
    %178 = arith.mulf %177, %176 : vector<16x16xf32>
    %179 = arith.addf %172, %178 : vector<16x16xf32>
    %c2_117 = arith.constant 2 : index
    %c3_118 = arith.constant 3 : index
    %180 = memref.load %arg4[%c2_117, %c3_118] : memref<4x6xf32, #tpu.memory_space<smem>>
    %c0_119 = arith.constant 0 : index
    %c0_120 = arith.constant 0 : index
    %c0_121 = arith.constant 0 : index
    %c0_122 = arith.constant 0 : index
    %181 = vector.load %arg2[%c0_119, %c0_120, %c0_121, %c0_122] : memref<1x2x16x16xf32, #tpu.memory_space<vmem>>, vector<1x1x16x16xf32>
    %182 = vector.shape_cast %181 : vector<1x1x16x16xf32> to vector<16x16xf32>
    %183 = vector.broadcast %180 : f32 to vector<16x16xf32>
    %184 = arith.mulf %183, %182 : vector<16x16xf32>
    %185 = arith.addf %179, %184 : vector<16x16xf32>
    %c3_123 = arith.constant 3 : index
    %c3_124 = arith.constant 3 : index
    %186 = memref.load %arg4[%c3_123, %c3_124] : memref<4x6xf32, #tpu.memory_space<smem>>
    %c0_125 = arith.constant 0 : index
    %c1_126 = arith.constant 1 : index
    %c0_127 = arith.constant 0 : index
    %c0_128 = arith.constant 0 : index
    %187 = vector.load %arg2[%c0_125, %c1_126, %c0_127, %c0_128] : memref<1x2x16x16xf32, #tpu.memory_space<vmem>>, vector<1x1x16x16xf32>
    %188 = vector.shape_cast %187 : vector<1x1x16x16xf32> to vector<16x16xf32>
    %189 = vector.broadcast %186 : f32 to vector<16x16xf32>
    %190 = arith.mulf %189, %188 : vector<16x16xf32>
    %191 = arith.addf %185, %190 : vector<16x16xf32>
    %cst_129 = arith.constant 0.000000e+00 : f32
    %192 = vector.broadcast %cst_129 : f32 to vector<16x16xf32>
    %193 = arith.cmpf ogt, %191, %192 : vector<16x16xf32>
    %cst_130 = arith.constant 0.000000e+00 : f32
    %194 = vector.broadcast %cst_130 : f32 to vector<16x16xf32>
    %195 = arith.minimumf %191, %194 : vector<16x16xf32>
    %196 = math.exp %195 : vector<16x16xf32>
    %cst_131 = arith.constant 1.000000e+00 : f32
    %197 = vector.broadcast %cst_131 : f32 to vector<16x16xf32>
    %198 = arith.subf %196, %197 : vector<16x16xf32>
    %199 = arith.select %193, %191, %198 : vector<16x16xi1>, vector<16x16xf32>
    %c3_132 = arith.constant 3 : index
    %c0_133 = arith.constant 0 : index
    %200 = memref.load %arg6[%c3_132, %c0_133] : memref<6x3xf32, #tpu.memory_space<smem>>
    %201 = vector.broadcast %200 : f32 to vector<16x16xf32>
    %202 = arith.mulf %201, %199 : vector<16x16xf32>
    %203 = arith.addf %154, %202 : vector<16x16xf32>
    %c3_134 = arith.constant 3 : index
    %c1_135 = arith.constant 1 : index
    %204 = memref.load %arg6[%c3_134, %c1_135] : memref<6x3xf32, #tpu.memory_space<smem>>
    %205 = vector.broadcast %204 : f32 to vector<16x16xf32>
    %206 = arith.mulf %205, %199 : vector<16x16xf32>
    %207 = arith.addf %158, %206 : vector<16x16xf32>
    %c3_136 = arith.constant 3 : index
    %c2_137 = arith.constant 2 : index
    %208 = memref.load %arg6[%c3_136, %c2_137] : memref<6x3xf32, #tpu.memory_space<smem>>
    %209 = vector.broadcast %208 : f32 to vector<16x16xf32>
    %210 = arith.mulf %209, %199 : vector<16x16xf32>
    %211 = arith.addf %162, %210 : vector<16x16xf32>
    %c4 = arith.constant 4 : index
    %212 = memref.load %arg5[%c4] : memref<6xf32, #tpu.memory_space<smem>>
    %213 = vector.broadcast %212 : f32 to vector<16x16xf32>
    %214 = arith.addf %6, %213 : vector<16x16xf32>
    %c0_138 = arith.constant 0 : index
    %c4_139 = arith.constant 4 : index
    %215 = memref.load %arg4[%c0_138, %c4_139] : memref<4x6xf32, #tpu.memory_space<smem>>
    %c0_140 = arith.constant 0 : index
    %c0_141 = arith.constant 0 : index
    %c0_142 = arith.constant 0 : index
    %c0_143 = arith.constant 0 : index
    %216 = vector.load %arg1[%c0_140, %c0_141, %c0_142, %c0_143] : memref<2x1x16x16xbf16, #tpu.memory_space<vmem>>, vector<1x1x16x16xbf16>
    %217 = vector.shape_cast %216 : vector<1x1x16x16xbf16> to vector<16x16xbf16>
    %218 = arith.extf %217 : vector<16x16xbf16> to vector<16x16xf32>
    %219 = vector.broadcast %215 : f32 to vector<16x16xf32>
    %220 = arith.mulf %219, %218 : vector<16x16xf32>
    %221 = arith.addf %214, %220 : vector<16x16xf32>
    %c1_144 = arith.constant 1 : index
    %c4_145 = arith.constant 4 : index
    %222 = memref.load %arg4[%c1_144, %c4_145] : memref<4x6xf32, #tpu.memory_space<smem>>
    %c1_146 = arith.constant 1 : index
    %c0_147 = arith.constant 0 : index
    %c0_148 = arith.constant 0 : index
    %c0_149 = arith.constant 0 : index
    %223 = vector.load %arg1[%c1_146, %c0_147, %c0_148, %c0_149] : memref<2x1x16x16xbf16, #tpu.memory_space<vmem>>, vector<1x1x16x16xbf16>
    %224 = vector.shape_cast %223 : vector<1x1x16x16xbf16> to vector<16x16xbf16>
    %225 = arith.extf %224 : vector<16x16xbf16> to vector<16x16xf32>
    %226 = vector.broadcast %222 : f32 to vector<16x16xf32>
    %227 = arith.mulf %226, %225 : vector<16x16xf32>
    %228 = arith.addf %221, %227 : vector<16x16xf32>
    %c2_150 = arith.constant 2 : index
    %c4_151 = arith.constant 4 : index
    %229 = memref.load %arg4[%c2_150, %c4_151] : memref<4x6xf32, #tpu.memory_space<smem>>
    %c0_152 = arith.constant 0 : index
    %c0_153 = arith.constant 0 : index
    %c0_154 = arith.constant 0 : index
    %c0_155 = arith.constant 0 : index
    %230 = vector.load %arg2[%c0_152, %c0_153, %c0_154, %c0_155] : memref<1x2x16x16xf32, #tpu.memory_space<vmem>>, vector<1x1x16x16xf32>
    %231 = vector.shape_cast %230 : vector<1x1x16x16xf32> to vector<16x16xf32>
    %232 = vector.broadcast %229 : f32 to vector<16x16xf32>
    %233 = arith.mulf %232, %231 : vector<16x16xf32>
    %234 = arith.addf %228, %233 : vector<16x16xf32>
    %c3_156 = arith.constant 3 : index
    %c4_157 = arith.constant 4 : index
    %235 = memref.load %arg4[%c3_156, %c4_157] : memref<4x6xf32, #tpu.memory_space<smem>>
    %c0_158 = arith.constant 0 : index
    %c1_159 = arith.constant 1 : index
    %c0_160 = arith.constant 0 : index
    %c0_161 = arith.constant 0 : index
    %236 = vector.load %arg2[%c0_158, %c1_159, %c0_160, %c0_161] : memref<1x2x16x16xf32, #tpu.memory_space<vmem>>, vector<1x1x16x16xf32>
    %237 = vector.shape_cast %236 : vector<1x1x16x16xf32> to vector<16x16xf32>
    %238 = vector.broadcast %235 : f32 to vector<16x16xf32>
    %239 = arith.mulf %238, %237 : vector<16x16xf32>
    %240 = arith.addf %234, %239 : vector<16x16xf32>
    %cst_162 = arith.constant 0.000000e+00 : f32
    %241 = vector.broadcast %cst_162 : f32 to vector<16x16xf32>
    %242 = arith.cmpf ogt, %240, %241 : vector<16x16xf32>
    %cst_163 = arith.constant 0.000000e+00 : f32
    %243 = vector.broadcast %cst_163 : f32 to vector<16x16xf32>
    %244 = arith.minimumf %240, %243 : vector<16x16xf32>
    %245 = math.exp %244 : vector<16x16xf32>
    %cst_164 = arith.constant 1.000000e+00 : f32
    %246 = vector.broadcast %cst_164 : f32 to vector<16x16xf32>
    %247 = arith.subf %245, %246 : vector<16x16xf32>
    %248 = arith.select %242, %240, %247 : vector<16x16xi1>, vector<16x16xf32>
    %c4_165 = arith.constant 4 : index
    %c0_166 = arith.constant 0 : index
    %249 = memref.load %arg6[%c4_165, %c0_166] : memref<6x3xf32, #tpu.memory_space<smem>>
    %250 = vector.broadcast %249 : f32 to vector<16x16xf32>
    %251 = arith.mulf %250, %248 : vector<16x16xf32>
    %252 = arith.addf %203, %251 : vector<16x16xf32>
    %c4_167 = arith.constant 4 : index
    %c1_168 = arith.constant 1 : index
    %253 = memref.load %arg6[%c4_167, %c1_168] : memref<6x3xf32, #tpu.memory_space<smem>>
    %254 = vector.broadcast %253 : f32 to vector<16x16xf32>
    %255 = arith.mulf %254, %248 : vector<16x16xf32>
    %256 = arith.addf %207, %255 : vector<16x16xf32>
    %c4_169 = arith.constant 4 : index
    %c2_170 = arith.constant 2 : index
    %257 = memref.load %arg6[%c4_169, %c2_170] : memref<6x3xf32, #tpu.memory_space<smem>>
    %258 = vector.broadcast %257 : f32 to vector<16x16xf32>
    %259 = arith.mulf %258, %248 : vector<16x16xf32>
    %260 = arith.addf %211, %259 : vector<16x16xf32>
    %c5 = arith.constant 5 : index
    %261 = memref.load %arg5[%c5] : memref<6xf32, #tpu.memory_space<smem>>
    %262 = vector.broadcast %261 : f32 to vector<16x16xf32>
    %263 = arith.addf %6, %262 : vector<16x16xf32>
    %c0_171 = arith.constant 0 : index
    %c5_172 = arith.constant 5 : index
    %264 = memref.load %arg4[%c0_171, %c5_172] : memref<4x6xf32, #tpu.memory_space<smem>>
    %c0_173 = arith.constant 0 : index
    %c0_174 = arith.constant 0 : index
    %c0_175 = arith.constant 0 : index
    %c0_176 = arith.constant 0 : index
    %265 = vector.load %arg1[%c0_173, %c0_174, %c0_175, %c0_176] : memref<2x1x16x16xbf16, #tpu.memory_space<vmem>>, vector<1x1x16x16xbf16>
    %266 = vector.shape_cast %265 : vector<1x1x16x16xbf16> to vector<16x16xbf16>
    %267 = arith.extf %266 : vector<16x16xbf16> to vector<16x16xf32>
    %268 = vector.broadcast %264 : f32 to vector<16x16xf32>
    %269 = arith.mulf %268, %267 : vector<16x16xf32>
    %270 = arith.addf %263, %269 : vector<16x16xf32>
    %c1_177 = arith.constant 1 : index
    %c5_178 = arith.constant 5 : index
    %271 = memref.load %arg4[%c1_177, %c5_178] : memref<4x6xf32, #tpu.memory_space<smem>>
    %c1_179 = arith.constant 1 : index
    %c0_180 = arith.constant 0 : index
    %c0_181 = arith.constant 0 : index
    %c0_182 = arith.constant 0 : index
    %272 = vector.load %arg1[%c1_179, %c0_180, %c0_181, %c0_182] : memref<2x1x16x16xbf16, #tpu.memory_space<vmem>>, vector<1x1x16x16xbf16>
    %273 = vector.shape_cast %272 : vector<1x1x16x16xbf16> to vector<16x16xbf16>
    %274 = arith.extf %273 : vector<16x16xbf16> to vector<16x16xf32>
    %275 = vector.broadcast %271 : f32 to vector<16x16xf32>
    %276 = arith.mulf %275, %274 : vector<16x16xf32>
    %277 = arith.addf %270, %276 : vector<16x16xf32>
    %c2_183 = arith.constant 2 : index
    %c5_184 = arith.constant 5 : index
    %278 = memref.load %arg4[%c2_183, %c5_184] : memref<4x6xf32, #tpu.memory_space<smem>>
    %c0_185 = arith.constant 0 : index
    %c0_186 = arith.constant 0 : index
    %c0_187 = arith.constant 0 : index
    %c0_188 = arith.constant 0 : index
    %279 = vector.load %arg2[%c0_185, %c0_186, %c0_187, %c0_188] : memref<1x2x16x16xf32, #tpu.memory_space<vmem>>, vector<1x1x16x16xf32>
    %280 = vector.shape_cast %279 : vector<1x1x16x16xf32> to vector<16x16xf32>
    %281 = vector.broadcast %278 : f32 to vector<16x16xf32>
    %282 = arith.mulf %281, %280 : vector<16x16xf32>
    %283 = arith.addf %277, %282 : vector<16x16xf32>
    %c3_189 = arith.constant 3 : index
    %c5_190 = arith.constant 5 : index
    %284 = memref.load %arg4[%c3_189, %c5_190] : memref<4x6xf32, #tpu.memory_space<smem>>
    %c0_191 = arith.constant 0 : index
    %c1_192 = arith.constant 1 : index
    %c0_193 = arith.constant 0 : index
    %c0_194 = arith.constant 0 : index
    %285 = vector.load %arg2[%c0_191, %c1_192, %c0_193, %c0_194] : memref<1x2x16x16xf32, #tpu.memory_space<vmem>>, vector<1x1x16x16xf32>
    %286 = vector.shape_cast %285 : vector<1x1x16x16xf32> to vector<16x16xf32>
    %287 = vector.broadcast %284 : f32 to vector<16x16xf32>
    %288 = arith.mulf %287, %286 : vector<16x16xf32>
    %289 = arith.addf %283, %288 : vector<16x16xf32>
    %cst_195 = arith.constant 0.000000e+00 : f32
    %290 = vector.broadcast %cst_195 : f32 to vector<16x16xf32>
    %291 = arith.cmpf ogt, %289, %290 : vector<16x16xf32>
    %cst_196 = arith.constant 0.000000e+00 : f32
    %292 = vector.broadcast %cst_196 : f32 to vector<16x16xf32>
    %293 = arith.minimumf %289, %292 : vector<16x16xf32>
    %294 = math.exp %293 : vector<16x16xf32>
    %cst_197 = arith.constant 1.000000e+00 : f32
    %295 = vector.broadcast %cst_197 : f32 to vector<16x16xf32>
    %296 = arith.subf %294, %295 : vector<16x16xf32>
    %297 = arith.select %291, %289, %296 : vector<16x16xi1>, vector<16x16xf32>
    %c5_198 = arith.constant 5 : index
    %c0_199 = arith.constant 0 : index
    %298 = memref.load %arg6[%c5_198, %c0_199] : memref<6x3xf32, #tpu.memory_space<smem>>
    %299 = vector.broadcast %298 : f32 to vector<16x16xf32>
    %300 = arith.mulf %299, %297 : vector<16x16xf32>
    %301 = arith.addf %252, %300 : vector<16x16xf32>
    %c5_200 = arith.constant 5 : index
    %c1_201 = arith.constant 1 : index
    %302 = memref.load %arg6[%c5_200, %c1_201] : memref<6x3xf32, #tpu.memory_space<smem>>
    %303 = vector.broadcast %302 : f32 to vector<16x16xf32>
    %304 = arith.mulf %303, %297 : vector<16x16xf32>
    %305 = arith.addf %256, %304 : vector<16x16xf32>
    %c5_202 = arith.constant 5 : index
    %c2_203 = arith.constant 2 : index
    %306 = memref.load %arg6[%c5_202, %c2_203] : memref<6x3xf32, #tpu.memory_space<smem>>
    %307 = vector.broadcast %306 : f32 to vector<16x16xf32>
    %308 = arith.mulf %307, %297 : vector<16x16xf32>
    %309 = arith.addf %260, %308 : vector<16x16xf32>
    %310 = tpu.transpose %301, [1, 0] : vector<16x16xf32> -> vector<16x16xf32>
    %311 = arith.addf %301, %310 : vector<16x16xf32>
    %312 = arith.mulf %311, %5 : vector<16x16xf32>
    %c0_204 = arith.constant 0 : index
    %c0_205 = arith.constant 0 : index
    %c0_206 = arith.constant 0 : index
    %c0_207 = arith.constant 0 : index
    %313 = vector.load %arg8[%c0_204, %c0_205, %c0_206, %c0_207] : memref<1x3x16x16xf32, #tpu.memory_space<vmem>>, vector<1x1x16x16xf32>
    %314 = vector.shape_cast %313 : vector<1x1x16x16xf32> to vector<16x16xf32>
    %315 = vector.shape_cast %312 : vector<16x16xf32> to vector<1x1x16x16xf32>
    tpu.vector_store %arg8[%c0_204, %c0_205, %c0_206, %c0_207], %315 {strides = array<i32>} : memref<1x3x16x16xf32, #tpu.memory_space<vmem>>, vector<1x1x16x16xf32>,
    %316 = tpu.transpose %305, [1, 0] : vector<16x16xf32> -> vector<16x16xf32>
    %317 = arith.addf %305, %316 : vector<16x16xf32>
    %318 = arith.mulf %317, %5 : vector<16x16xf32>
    %c0_208 = arith.constant 0 : index
    %c1_209 = arith.constant 1 : index
    %c0_210 = arith.constant 0 : index
    %c0_211 = arith.constant 0 : index
    %319 = vector.load %arg8[%c0_208, %c1_209, %c0_210, %c0_211] : memref<1x3x16x16xf32, #tpu.memory_space<vmem>>, vector<1x1x16x16xf32>
    %320 = vector.shape_cast %319 : vector<1x1x16x16xf32> to vector<16x16xf32>
    %321 = vector.shape_cast %318 : vector<16x16xf32> to vector<1x1x16x16xf32>
    tpu.vector_store %arg8[%c0_208, %c1_209, %c0_210, %c0_211], %321 {strides = array<i32>} : memref<1x3x16x16xf32, #tpu.memory_space<vmem>>, vector<1x1x16x16xf32>,
    %322 = tpu.transpose %309, [1, 0] : vector<16x16xf32> -> vector<16x16xf32>
    %323 = arith.addf %309, %322 : vector<16x16xf32>
    %324 = arith.mulf %323, %5 : vector<16x16xf32>
    %c0_212 = arith.constant 0 : index
    %c2_213 = arith.constant 2 : index
    %c0_214 = arith.constant 0 : index
    %c0_215 = arith.constant 0 : index
    %325 = vector.load %arg8[%c0_212, %c2_213, %c0_214, %c0_215] : memref<1x3x16x16xf32, #tpu.memory_space<vmem>>, vector<1x1x16x16xf32>
    %326 = vector.shape_cast %325 : vector<1x1x16x16xf32> to vector<16x16xf32>
    %327 = vector.shape_cast %324 : vector<16x16xf32> to vector<1x1x16x16xf32>
    tpu.vector_store %arg8[%c0_212, %c2_213, %c0_214, %c0_215], %327 {strides = array<i32>} : memref<1x3x16x16xf32, #tpu.memory_space<vmem>>, vector<1x1x16x16xf32>,
    return
  }
  func.func @transform_0(%arg0: i32) -> (i32, i32, i32, i32) {
    %c0_i32 = arith.constant 0 : i32
    %c0_i32_0 = arith.constant 0 : i32
    %c0_i32_1 = arith.constant 0 : i32
    %c0_i32_2 = arith.constant 0 : i32
    return %c0_i32, %arg0, %c0_i32_0, %c0_i32_1 : i32, i32, i32, i32
  }
  func.func @transform_1(%arg0: i32) -> (i32, i32, i32, i32) {
    %c0_i32 = arith.constant 0 : i32
    %c0_i32_0 = arith.constant 0 : i32
    %c0_i32_1 = arith.constant 0 : i32
    %c0_i32_2 = arith.constant 0 : i32
    return %arg0, %c0_i32, %c0_i32_0, %c0_i32_1 : i32, i32, i32, i32
  }
  func.func @transform_2(%arg0: i32) -> (i32, i32, i32) {
    %c0_i32 = arith.constant 0 : i32
    %c0_i32_0 = arith.constant 0 : i32
    %c0_i32_1 = arith.constant 0 : i32
    return %arg0, %c0_i32, %c0_i32_0 : i32, i32, i32
  }
  func.func @transform_3(%arg0: i32) -> (i32, i32) {
    %c0_i32 = arith.constant 0 : i32
    %c0_i32_0 = arith.constant 0 : i32
    %c0_i32_1 = arith.constant 0 : i32
    return %c0_i32, %c0_i32_0 : i32, i32
  }
  func.func @transform_4(%arg0: i32) -> i32 {
    %c0_i32 = arith.constant 0 : i32
    %c0_i32_0 = arith.constant 0 : i32
    return %c0_i32 : i32
  }
  func.func @transform_5(%arg0: i32) -> (i32, i32) {
    %c0_i32 = arith.constant 0 : i32
    %c0_i32_0 = arith.constant 0 : i32
    %c0_i32_1 = arith.constant 0 : i32
    return %c0_i32, %c0_i32_0 : i32, i32
  }
  func.func @transform_6(%arg0: i32) -> i32 {
    %c0_i32 = arith.constant 0 : i32
    %c0_i32_0 = arith.constant 0 : i32
    return %c0_i32 : i32
  }
  func.func @transform_7(%arg0: i32) -> (i32, i32, i32, i32) {
    %c0_i32 = arith.constant 0 : i32
    %c0_i32_0 = arith.constant 0 : i32
    %c0_i32_1 = arith.constant 0 : i32
    %c0_i32_2 = arith.constant 0 : i32
    return %arg0, %c0_i32, %c0_i32_0, %c0_i32_1 : i32, i32, i32, i32
  }
}

</mosaic_0001>

<bundles_post_ra>
// kernel: attention_layer_forward.3
= control target key start
LH: loop header
LB: loop body
LE: loop exit
PB: predicated region body
PF: predicated region fallthrough
CT: control target
= control target key end

     0   :  { %s2074_s0 = inlined_call_operand.vmem [shape: bf16[2,2,16,16], index: 0, kind: input, shape index: {}]   ;;  %s2075_s1 = inlined_call_operand.vmem [shape: f32[2,2,16,16], index: 1, kind: input, shape index: {}]   ;;  %s2076_s2 = inlined_call_operand.vmem [shape: f32[2,1,16], index: 2, kind: input, shape index: {}]   ;;  %s2077_s3 = inlined_call_operand.vmem [shape: f32[4,6], index: 3, kind: input, shape index: {}]   ;;  %s2078_s4 = inlined_call_operand.vmem [shape: f32[6], index: 4, kind: input, shape index: {}]   ;;  %s2079_s5 = inlined_call_operand.vmem [shape: f32[6,3], index: 5, kind: input, shape index: {}]   ;;  %s2080_s6 = inlined_call_operand.vmem [shape: f32[3], index: 6, kind: input, shape index: {}]   ;;  %s2081_s7 = inlined_call_operand.hbm [shape: f32[2,3,16,16], index: 7, kind: output, shape index: {}]  }
   0x1   :  { %2086 = sst [smem:[#allocation20_spill]] %s2074_s0 }
   0x2   :  { %2087 = sst [smem:[#allocation21_spill]] %s2075_s1 }
   0x3   :  { %2088 = sst [smem:[#allocation22_spill]] %s2076_s2 }
   0x4   :  { %2089 = sst [smem:[#allocation23_spill]] %s2077_s3 }
   0x5   :  { %2090 = sst [smem:[#allocation24_spill]] %s2078_s4 }
   0x6   :  { %2091 = sst [smem:[#allocation25_spill]] %s2079_s5 }
   0x7   :  { %2092 = sst [smem:[#allocation26_spill]] %s2080_s6 }
   0x8   :  { %12 = vsyncpa [#allocation5], 0 }
   0x9   :  { %13 = vsyncpa [#allocation7], 0 }
   0xa   :  { %14 = vsyncpa [#allocation10], 0 }
   0xb   :  { %15 = vsyncpa [#allocation4], 0 }
   0xc   :  { %17 = vsyncpa [#allocation4 + $0x1], 0  ;;  %s1490_s24 = smov 0   ;;  %s1492_s25 = smov 0  }
   0xd   :  { %s1494_s26 = smov 0   ;;  %s1496_s27 = smov 0  }
   0xe LB: > { %2093 = sst [smem:[#allocation16_spill]] %s1433_s25  ;;  %s1511_s28 = sadd.s32 4294967295, %s1441_s27   ;;  %s1441_s27 = sphi %s1496_s27, %s2108_s27   ;;  %s1437_s26 = sphi %s1494_s26, %s2111_s26   ;;  %s1433_s25 = sphi %s1492_s25, %s2110_s25   ;;  %s1429_s24 = sphi %s1490_s24, %s2109_s24  }
   0xf   : > { %2094 = sst [smem:[#allocation17_spill]] %s1437_s26  ;;  %s1095_s29 = sadd.s32 4294967294, %s1441_s27  }
  0x10   : > { %s1515_s30 = sadd.s32 1, %s1441_s27   ;;  %s30_s8 = sadd.s32 1, %s1437_s26 }
  0x11   : > { %2095 = sst [smem:[#allocation18_spill]] %s1515_s30  ;;  %s27_s9 = ssub.s32 %s1441_s27, %s1515_s30 }
  0x12   : > { %p37_p0 = scmp.ne.s32.totalorder %s1437_s26, %s1433_s25  ;;  %p28_p1 = scmp.eq.s32.totalorder %s27_s9, 0 }
  0x13   : > { %p38_p2 = scmp.eq.s32.totalorder %s1441_s27, 0  ;;  %p203_p3 = scmp.eq.s32.totalorder %s1511_s28, 1 }
  0x14   : > { %p208_p4 = scmp.ne.s32.totalorder %s1433_s25, %s1429_s24  ;;  %p209_p7 = scmp.eq.s32.totalorder %s1095_s29, 1 }
  0x15   : > { %s1527_s10 = scalar_select %p28_p1, %s1437_s26, %s30_s8  }
  0x16   : > { %p1529_p5 = por %p38_p2, %p37_p0  ;;  %p1533_p6 = por %p203_p3, %p37_p0 }
  0x17   : > { %2096 = sst [smem:[#allocation19_spill]] %s1527_s10  ;;  %p1096_p8 = scmp.ge.s32.totalorder %s1441_s27, 1 }
  0x18   : > { %p216_p9 = scmp.lt.s32.totalorder %s1441_s27, 3  ;;  %p1539_p10 = por %p209_p7, %p208_p4 }
  0x19   : > { %p1231_p11 = scmp.eq.s32.totalorder %s1511_s28, 0  ;;  %s2101_s4 = sld [smem:[#allocation24_spill]] }
  0x1a   : > { %p1544_p12 = pnand %p1096_p8, %p216_p9  ;;  %s2102_s3 = sld [smem:[#allocation23_spill]] }
  0x1b   : > { %s2103_s5 = sld [smem:[#allocation25_spill]]  ;;  %s1443_s15 = smov [#allocation6]  }
  0x1c   : > { %p1214_p13 = pneg %p1544_p12  ;;  %s2104_s6 = sld [smem:[#allocation26_spill]] }
  0x1d   : > { %s1444_s16 = smov [#allocation3]   ;;  %s1446_s18 = smov [#allocation9]  }
  0x1e   : > { %p1215_p0 = pnand %p1231_p11, %p1214_p13  ;;  %p1101_p1 = scmp.ge.s32.totalorder %s1441_s27, 2 }
  0x1f   : > { %s238_s17 = sshll.u32 %s2101_s4, 4  ;;  %s1445_s4 = smov [#allocation8]   ;;  %s239_s17 = int_to_ptr.vmem [resolvable:$true] %s238_s17 }
  0x20   : > { %s228_s20 = sshll.u32 %s2102_s3, 4  ;;  %s229_s20 = int_to_ptr.vmem [resolvable:$true] %s228_s20 }
  0x21   : > { %s248_s23 = sshll.u32 %s2103_s5, 4  ;;  %s249_s23 = int_to_ptr.vmem [resolvable:$true] %s248_s23 }
  0x22   : > { %s258_s9 = sshll.u32 %s2104_s6, 4  ;;  %265 = sbr.rel (%p1101_p1) target bundleno = 51 (0x33), region = 32  ;;  %s259_s9 = int_to_ptr.vmem [resolvable:$true] %s258_s9 }
  0x23   : > { %1220 = dma.vmem_to_smem (!%p1215_p0), %s239_s17, 16, %s1443_s15, [#allocation7]  }
  0x24   : > { %1217 = dma.vmem_to_smem (!%p1215_p0), %s229_s20, 64, %s1444_s16, [#allocation5]  }
  0x25   : > { %1223 = dma.vmem_to_smem (!%p1215_p0), %s249_s23, 128, %s1445_s4, [#allocation7]  }
  0x26   : > { %1226 = dma.vmem_to_smem (!%p1215_p0), %s259_s9, 16, %s1446_s18, [#allocation10]  }
  0x27   : > { %268 = sbr.rel (!%p1529_p5) target bundleno = 51 (0x33), region = 36  ;;  %s270_s19 = sand.u32 (%p1529_p5), 1, %s1437_s26  }
  0x28   : > { %s1183_s21 = sshll.u32 (%p1529_p5), %s1441_s27, 3  ;;  %s1102_s17 = sshll.u32 (%p1529_p5), %s270_s19, 4 }
  0x29   : > { %s2105_s0 = sld [smem:[#allocation20_spill]] (%p1529_p5)  ;;  %s272_s23 = scalar_lea.vmem (%p1529_p5), [#allocation2], %s1102_s17 }
  0x2f   : > { %s275_s4 = scalar_lea.vmem %s2105_s0, %s1183_s21 }
  0x30   : > { %v292_v0 = vld [vmem:[%s275_s4] sm:$0xff]   ;;  %v296_v1 = vld [vmem:[%s275_s4 + $0x10] sm:$0xff]  }
  0x31   : > { %293 = vst [vmem:[%s272_s23] sm:$0xff] %v292_v0  }
  0x32   : > { %297 = vst [vmem:[%s272_s23 + $0x8] sm:$0xff] %v296_v1  }
  0x33 PF: > { %348 = sbr.rel (%p1544_p12) target bundleno = 482 (0x1e2), region = 85  ;;  %s1577_s11 = sand.u32 (!%p1544_p12), 1, %s1433_s25  }
  0x34   : > { %s1106_s29 = sshll.u32 (!%p1544_p12), %s1577_s11, 4 }
  0x35   : > { %s353_s8 = scalar_lea.vmem (!%p1544_p12), [#allocation2], %s1106_s29 }
  0x38   : > { %1412 = dma.done.wait (%p1231_p11), [#allocation5], 64  }
  0x39   : > { %1414 = vsyncadd (%p1231_p11), [#allocation5], 4294967232 }
  0x3a   : > { %1416 = dma.done.wait (%p1231_p11), [#allocation7], 144  }
  0x3b   : > { %1418 = vsyncadd (%p1231_p11), [#allocation7], 4294967152 }
  0x3c   : > { %1420 = dma.done.wait (%p1231_p11), [#allocation10], 16  }
  0x3d   : > { %1422 = vsyncadd (%p1231_p11), [#allocation10], 4294967280 }
  0x3e   : > { %377 = sfence }
  0x3f   : > { %p411_p2 = scmp.lt.s32.totalorder %s1511_s28, 1  ;;  %s1593_s14 = sld [smem:[#allocation6]]  ;;  %v1186_v2 = vld [vmem:[%s353_s8] sm:$0xff]   ;;  %v1193_v3 = vld [vmem:[%s353_s8 + $0x8] sm:$0xff]   ;;  %vm868_vm12 = vcmask 130048  }
  0x40   : > { %s1595_s9 = sld [smem:[#allocation3]]  ;;  %v1605_v4 = vunpack.c.l.bf16 %v1186_v2  ;;  %v1612_v6 = vunpack.c.l.bf16 %v1193_v3  ;;  %v1628_v10 = vunpack.c.h.bf16 %v1186_v2  ;;  %v1648_v21 = vunpack.c.h.bf16 %v1193_v3 }
  0x41   : > { %s412_s15 = scalar_select %p411_p2, %s1511_s28, 1 }
  0x42   : > { %s1598_s16 = sld [smem:[#allocation3 + $0x80]] }
  0x43   : > { %s2106_s2 = sld [smem:[#allocation22_spill]]  ;;  %s1184_s20 = sshll.u32 %s412_s15, 5 }
  0x44   : > { %s1607_s17 = sld [smem:[#allocation3 + $0x100]] }
  0x45   : > { %s1610_s22 = sld [smem:[#allocation3 + $0x180]]  ;;  %v477_v7 = vstv %s1593_s14 }
  0x46   : > { %s1614_s4 = sld [smem:[#allocation6 + $0x1]]  ;;  %v484_v8 = vstv %s1595_s9 }
  0x47   : > { %s2107_s1 = sld [smem:[#allocation21_spill]]  ;;  %v485_v9 = vmul.f32 %v1605_v4, %v484_v8  ;;  %v486_v20 = vmul.f32 %v1628_v10, %v484_v8 }
  0x48   : > { %s1623_s18 = sld [smem:[#allocation3 + $0x1]]  ;;  %v495_v11 = vstv %s1598_s16 }
  0x49   : > { %s1603_s21 = scalar_lea.vmem %s2106_s2, %s412_s15  ;;  %s1626_s15 = sld [smem:[#allocation3 + $0x81]]  ;;  %v487_v13 = vadd.f32 %v485_v9, %v477_v7  ;;  %v496_v14 = vmul.f32 %v1612_v6, %v495_v11  ;;  %v488_v32 = vadd.f32 %v486_v20, %v477_v7  ;;  %v497_v33 = vmul.f32 %v1648_v21, %v495_v11 }
  0x4a   : > { %v419_v5 = vld [vmem:[%s1603_s21] sm:$0x1]  ;;  %s1631_s19 = sld [smem:[#allocation3 + $0x101]]  ;;  %v503_v15 = vstv %s1607_s17 }
  0x4b   : > { %420 = vxpose.xlu0.b32.start.end [1/1] (short) (narrow) %v419_v5, 16  ;;  %s1637_s14 = sld [smem:[#allocation3 + $0x181]]  ;;  %v512_v16 = vstv %s1610_s22  ;;  %v498_v18 = vadd.f32 %v496_v14, %v487_v13  ;;  %v499_v41 = vadd.f32 %v497_v33, %v488_v32 }
  0x4c   : > { %s1644_s9 = sld [smem:[#allocation3 + $0x102]]  ;;  %v548_v22 = vstv %s1614_s4 }
  0x4d   : > { %s1619_s8 = scalar_lea.vmem %s2107_s1, %s1184_s20  ;;  %s1652_s16 = sld [smem:[#allocation3 + $0x182]] }
  0x4e   : > { %v1634_v12 = vld [vmem:[%s1619_s8] sm:$0xff]  ;;  %v1642_v17 = vld [vmem:[%s1619_s8 + $0x10] sm:$0xff]  ;;  %v551_v23 = vstv %s1623_s18  ;;  %s1656_s17 = sld [smem:[#allocation3 + $0x103]]  ;;  %v1671_v36 = vld [vmem:[%s1619_s8 + $0x8] sm:$0xff] }
  0x4f   : > { %v504_v19 = vmul.f32 %v503_v15, %v1634_v12  ;;  %v552_v24 = vmul.f32 %v1605_v4, %v551_v23  ;;  %v557_v25 = vstv %s1626_s15  ;;  %v513_v27 = vmul.f32 %v1642_v17, %v512_v16  ;;  %s1661_s22 = sld [smem:[#allocation9 + $0x1]]  ;;  %v1687_v43 = vld [vmem:[%s1619_s8 + $0x18] sm:$0xff] }
  0x50   : > { %v558_v28 = vmul.f32 %v1612_v6, %v557_v25  ;;  %v563_v29 = vstv %s1631_s19  ;;  %s1664_s20 = sld [smem:[#allocation8 + $0x1]]  ;;  %v553_v39 = vmul.f32 %v1628_v10, %v551_v23  ;;  %v505_v42 = vmul.f32 %v503_v15, %v1671_v36 }
  0x51   : > { %v506_v26 = vadd.f32 %v504_v19, %v498_v18  ;;  %v554_v30 = vadd.f32 %v552_v24, %v548_v22  ;;  %v569_v31 = vstv %s1637_s14  ;;  %v564_v34 = vmul.f32 %v563_v29, %v1634_v12  ;;  %s1668_s4 = sld [smem:[#allocation6 + $0x2]] }
  0x52   : > { %v570_v38 = vmul.f32 %v1642_v17, %v569_v31  ;;  %s1676_s23 = sld [smem:[#allocation3 + $0x2]]  ;;  %v555_v46 = vadd.f32 %v553_v39, %v548_v22  ;;  %v559_v47 = vmul.f32 %v1648_v21, %v557_v25  ;;  %v620_v48 = vstv %s1644_s9 }
  0x53   : > { %v560_v35 = vadd.f32 %v558_v28, %v554_v30  ;;  %v1673_v37 = vadd.f32 %v513_v27, %v506_v26  ;;  %s1679_s29 = sld [smem:[#allocation3 + $0x82]]  ;;  %v507_v53 = vadd.f32 %v505_v42, %v499_v41  ;;  %v514_v54 = vmul.f32 %v1687_v43, %v512_v16 }
  0x54   : > { %s1681_s18 = sld [smem:[#allocation8 + $0x81]]  ;;  %v626_v57 = vstv %s1652_s16  ;;  %v561_v60 = vadd.f32 %v559_v47, %v555_v46  ;;  %v565_v61 = vmul.f32 %v563_v29, %v1671_v36  ;;  %v621_v62 = vmul.f32 %v620_v48, %v1634_v12 }
  0x55   : > { %v566_v40 = vadd.f32 %v564_v34, %v560_v35  ;;  %s1684_s15 = sld [smem:[#allocation6 + $0x3]]  ;;  %v519_v44 = vmin.f32 %v1673_v37, 0.0  ;;  %v677_v0 = vstv %s1656_s17  ;;  %v627_v3 = vmul.f32 %v1642_v17, %v626_v57 }
  0x56   : > { %s1692_s19 = sld [smem:[#allocation3 + $0x3]]  ;;  %v1734_v9 = vadd.f32 %v514_v54, %v507_v53  ;;  %v1737_v11 = vmul.f32 %v1687_v43, %v569_v31  ;;  %v1740_v13 = vmul.f32 %v620_v48, %v1671_v36  ;;  %v1747_v15 = vadd.f32 %v565_v61, %v561_v60 }
  0x57   : > { %v1690_v45 = vadd.f32 %v570_v38, %v566_v40  ;;  %s1696_s14 = sld [smem:[#allocation3 + $0x83]]  ;;  %v521_v49 = vmul.f32 1.442695, %v519_v44  ;;  %v605_v51 = vstv %s1668_s4  ;;  %v1755_v22 = vmul.f32 %v1687_v43, %v626_v57 }
  0x58   : > { %v608_v52 = vstv %s1676_s23  ;;  %s1701_s8 = sld [smem:[#allocation3 + $0x183]]  ;;  %v678_v23 = vmul.f32 %v677_v0, %v1634_v12  ;;  %vm517_vm0 = vcmp.gt.f32.partialorder %v1673_v37, 0.0  ;;  %v1768_v30 = vmul.f32 %v677_v0, %v1671_v36 }
  0x59   : > { %v576_v50 = vmin.f32 %v1690_v45, 0.0  ;;  %v609_v55 = vmul.f32 %v1605_v4, %v608_v52  ;;  %v614_v56 = vstv %s1679_s29  ;;  %s1708_s9 = sld [smem:[#allocation8 + $0x101]]  ;;  %1283 = vpow2.f32 %v521_v49 }
  0x5a   : > { %v615_v59 = vmul.f32 %v1612_v6, %v614_v56  ;;  %s1714_s0 = sld [smem:[#allocation6 + $0x4]]  ;;  %v471_v34 = vstv %s1661_s22  ;;  %v536_v38 = vstv %s1664_s20  ;;  %vm574_vm1 = vcmp.gt.f32.partialorder %v1690_v45, 0.0 }
  0x5b   : > { %v578_v58 = vmul.f32 1.442695, %v576_v50  ;;  %v611_v63 = vadd.f32 %v609_v55, %v605_v51  ;;  %s1720_s1 = sld [smem:[#allocation3 + $0x4]]  ;;  %v662_v1 = vstv %s1684_s15  ;;  %v593_v48 = vstv %s1681_s18  ;;  %s1194_s18 = smul.u32 48, %s1577_s11 }
  0x5c   : > { %v665_v2 = vstv %s1692_s19  ;;  %s1725_s16 = sld [smem:[#allocation3 + $0x84]]  ;;  %vm518_vm4 = vcmp.gt.f32.partialorder %v1734_v9, 0.0 }
  0x5d   : > { %1285 = vpow2.f32 %v578_v58  ;;  %v617_v5 = vadd.f32 %v615_v59, %v611_v63  ;;  %v666_v7 = vmul.f32 %v1605_v4, %v665_v2  ;;  %v671_v8 = vstv %s1696_s14  ;;  %s1732_s2 = sld [smem:[#allocation3 + $0x104]]  ;;  %s410_s15 = scalar_lea.vmem [#allocation11], %s1194_s18 }
  0x5e   : > { %v672_v14 = vmul.f32 %v1612_v6, %v671_v8  ;;  %s1745_s17 = sld [smem:[#allocation3 + $0x184]]  ;;  %v683_v19 = vstv %s1701_s8 }
  0x5f   : > { %v623_v16 = vadd.f32 %v621_v62, %v617_v5  ;;  %v668_v18 = vadd.f32 %v666_v7, %v662_v1  ;;  %s1752_s3 = sld [smem:[#allocation8 + $0x181]]  ;;  %v1284_v20 = vpop.eup %1283  ;;  %v684_v31 = vmul.f32 %v1642_v17, %v683_v19  ;;  %v650_v49 = vstv %s1708_s9  ;;  %s962_s9 = sshll.u32 %s410_s15, 4  ;;  %s963_s9 = int_to_ptr.vmem [resolvable:$true] %s962_s9 }
  0x60   : > { %v719_v24 = vstv %s1714_s0  ;;  %s1760_s5 = sld [smem:[#allocation6 + $0x5]]  ;;  %v1122_v25 = vadd.f32 -1.0, %v1284_v20 }
  0x61   : > { %v1762_v26 = vadd.f32 %v627_v3, %v623_v16  ;;  %v674_v27 = vadd.f32 %v672_v14, %v668_v18  ;;  %v722_v28 = vstv %s1720_s1  ;;  %s1765_s6 = sld [smem:[#allocation3 + $0x5]] }
  0x62   : > { %v723_v32 = vmul.f32 %v1605_v4, %v722_v28  ;;  %v728_v33 = vstv %s1725_s16  ;;  %s1777_s10 = sld [smem:[#allocation3 + $0x85]]  ;;  %v1781_v35 = vsel %vm517_vm0, %v1673_v37, %v1122_v25  ;;  %v520_v25 = vmin.f32 %v1734_v9, 0.0 }
  0x63   : > { %v1286_v29 = vpop.eup %1285  ;;  %v633_v39 = vmin.f32 %v1762_v26, 0.0  ;;  %s1785_s26 = sld [smem:[#allocation3 + $0x105]]  ;;  %v680_v41 = vadd.f32 %v678_v23, %v674_v27  ;;  %v729_v44 = vmul.f32 %v1612_v6, %v728_v33  ;;  %v734_v46 = vstv %s1732_s2 }
  0x64   : > { %v1131_v40 = vadd.f32 -1.0, %v1286_v29  ;;  %v725_v42 = vadd.f32 %v723_v32, %v719_v24  ;;  %s1792_s25 = sld [smem:[#allocation3 + $0x185]]  ;;  %v740_v47 = vstv %s1745_s17  ;;  %v537_v54 = vmul.f32 %v536_v38, %v1781_v35  ;;  %s950_s17 = scalar_lea.sflag [#allocation4], %s1577_s11 }
  0x65   : > { %v635_v37 = vmul.f32 1.442695, %v633_v39  ;;  %v686_v50 = vadd.f32 %v684_v31, %v680_v41  ;;  %v735_v55 = vmul.f32 %v734_v46, %v1634_v12  ;;  %v741_v57 = vmul.f32 %v1642_v17, %v740_v47  ;;  %s1808_s30 = sld [smem:[#allocation8 + $0x201]] }
  0x66   : > { %v731_v53 = vadd.f32 %v729_v44, %v725_v42  ;;  %v1811_v58 = vsel %vm574_vm1, %v1690_v45, %v1131_v40  ;;  %v707_v60 = vstv %s1752_s3  ;;  %v776_v61 = vstv %s1760_s5  ;;  %s1896_s1 = sld [smem:[#allocation8 + $0x281]] }
  0x67   : > { %1287 = vpow2.f32 %v635_v37  ;;  %v690_v59 = vmin.f32 %v686_v50, 0.0  ;;  %v779_v63 = vstv %s1765_s6  ;;  %vm631_vm2 = vcmp.gt.f32.partialorder %v1762_v26, 0.0  ;;  %s1907_s0 = sld [smem:[#allocation8 + $0x2]] }
  0x68   : > { %v737_v62 = vadd.f32 %v735_v55, %v731_v53  ;;  %v785_v0 = vstv %s1777_s10  ;;  %v780_v7 = vmul.f32 %v1605_v4, %v779_v63  ;;  %v539_v14 = vadd.f32 %v537_v54, %v471_v34  ;;  %s1927_s2 = sld [smem:[#allocation9 + $0x2]] }
  0x69   : > { %v791_v3 = vstv %s1785_s26  ;;  %v692_v5 = vmul.f32 1.442695, %v690_v59  ;;  %v786_v45 = vmul.f32 %v1612_v6, %v785_v0  ;;  %v594_v16 = vmul.f32 %v593_v48, %v1811_v58  ;;  %s1937_s6 = sld [smem:[#allocation8 + $0x82]] }
  0x6a   : > { %v1830_v18 = vadd.f32 %v741_v57, %v737_v62  ;;  %v797_v20 = vstv %s1792_s25  ;;  %v782_v23 = vadd.f32 %v780_v7, %v776_v61  ;;  %v792_v4 = vmul.f32 %v791_v3, %v1634_v12  ;;  %s1954_s5 = sld [smem:[#allocation8 + $0x102]] }
  0x6b   : > { %1289 = vpow2.f32 %v692_v5  ;;  %v798_v29 = vmul.f32 %v1642_v17, %v797_v20  ;;  %v1845_v31 = vadd.f32 %v1737_v11, %v1747_v15  ;;  %v610_v32 = vmul.f32 %v1628_v10, %v608_v52  ;;  %s1978_s25 = sld [smem:[#allocation8 + $0x182]] }
  0x6c   : > { %v747_v27 = vmin.f32 %v1830_v18, 0.0  ;;  %v788_v40 = vadd.f32 %v786_v45, %v782_v23  ;;  %v523_v41 = vmul.f32 1.442695, %v520_v25  ;;  %v616_v12 = vmul.f32 %v1648_v21, %v614_v56  ;;  %s1990_s26 = sld [smem:[#allocation8 + $0x202]] }
  0x6d   : > { %v1288_v6 = vpop.eup %1287  ;;  %v764_v44 = vstv %s1808_s30  ;;  %v577_v17 = vmin.f32 %v1845_v31, 0.0  ;;  %v612_v37 = vadd.f32 %v610_v32, %v605_v51  ;;  %v667_v15 = vmul.f32 %v1628_v10, %v665_v2  ;;  %s1175_s10 = sld [smem:[#allocation8 + $0x282]] }
  0x6e   : > { %v1141_v39 = vadd.f32 -1.0, %v1288_v6  ;;  %v749_v42 = vmul.f32 1.442695, %v747_v27  ;;  %v794_v52 = vadd.f32 %v792_v4, %v788_v40  ;;  %1291 = vpow2.f32 %v523_v41  ;;  %s529_s3 = sld [smem:[#allocation8]] }
  0x6f   : > { %v596_v56 = vadd.f32 %v594_v16, %v539_v14  ;;  %v580_v53 = vmul.f32 1.442695, %v577_v17  ;;  %v618_v54 = vadd.f32 %v616_v12, %v612_v37  ;;  %vm688_vm3 = vcmp.gt.f32.partialorder %v686_v50, 0.0  ;;  %s467_s30 = sld [smem:[#allocation9]] }
  0x70   : > { %v1860_v11 = vsel %vm631_vm2, %v1762_v26, %v1141_v39  ;;  %1293 = vpow2.f32 %v749_v42  ;;  %v1865_v51 = vadd.f32 %v798_v29, %v794_v52  ;;  %v669_v57 = vadd.f32 %v667_v15, %v662_v1  ;;  %s1133_s22 = sld [smem:[#allocation8 + $0x80]] }
  0x71   : > { %v1290_v55 = vpop.eup %1289  ;;  %v673_v26 = vmul.f32 %v1648_v21, %v671_v8  ;;  %v651_v59 = vmul.f32 %v650_v49, %v1860_v11  ;;  %1295 = vpow2.f32 %v580_v53  ;;  %v624_v62 = vadd.f32 %v1740_v13, %v618_v54  ;;  %s1143_s20 = sld [smem:[#allocation8 + $0x100]] }
  0x72   : > { %v1151_v2 = vadd.f32 -1.0, %v1290_v55  ;;  %v804_v5 = vmin.f32 %v1865_v51, 0.0  ;;  %v685_v45 = vmul.f32 %v1687_v43, %v683_v19  ;;  %v724_v1 = vmul.f32 %v1628_v10, %v722_v28  ;;  %s1153_s4 = sld [smem:[#allocation8 + $0x180]] }
  0x73   : > { %v675_v7 = vadd.f32 %v673_v26, %v669_v57  ;;  %v1887_v14 = vadd.f32 %v1755_v22, %v624_v62  ;;  %v730_v13 = vmul.f32 %v1648_v21, %v728_v33  ;;  %vm745_vm5 = vcmp.gt.f32.partialorder %v1830_v18, 0.0  ;;  %s1163_s23 = sld [smem:[#allocation8 + $0x200]] }
  0x74   : > { %v1883_v8 = vsel %vm688_vm3, %v686_v50, %v1151_v2  ;;  %v1292_v16 = vpop.eup %1291  ;;  %v806_v23 = vmul.f32 1.442695, %v804_v5  ;;  %v726_v28 = vadd.f32 %v724_v1, %v719_v24  ;;  %v653_v4 = vadd.f32 %v651_v59, %v596_v56  ;;  %s1173_s29 = sld [smem:[#allocation8 + $0x280]] }
  0x75   : > { %v681_v19 = vadd.f32 %v1768_v30, %v675_v7  ;;  %v1123_v25 = vadd.f32 -1.0, %v1292_v16  ;;  %v634_v22 = vmin.f32 %v1887_v14, 0.0  ;;  %v736_v33 = vmul.f32 %v734_v46, %v1671_v36 }
  0x76   : > { %v1294_v50 = vpop.eup %1293  ;;  %v708_v6 = vmul.f32 %v707_v60, %v1883_v8  ;;  %1297 = vpow2.f32 %v806_v23  ;;  %v732_v32 = vadd.f32 %v730_v13, %v726_v28  ;;  %v742_v39 = vmul.f32 %v1687_v43, %v740_v47 }
  0x77   : > { %v1161_v27 = vadd.f32 -1.0, %v1294_v50  ;;  %v1905_v30 = vadd.f32 %v685_v45, %v681_v19  ;;  %v1296_v24 = vpop.eup %1295  ;;  %v637_v29 = vmul.f32 1.442695, %v634_v22  ;;  %v781_v46 = vmul.f32 %v1628_v10, %v779_v63 }
  0x78   : > { %v1923_v41 = vsel %vm518_vm4, %v1734_v9, %v1123_v25  ;;  %v1132_v12 = vadd.f32 -1.0, %v1296_v24  ;;  %vm575_vm6 = vcmp.gt.f32.partialorder %v1845_v31, 0.0  ;;  %v738_v42 = vadd.f32 %v736_v33, %v732_v32 }
  0x79   : > { %v1918_v40 = vsel %vm745_vm5, %v1830_v18, %v1161_v27  ;;  %1299 = vpow2.f32 %v637_v29  ;;  %v691_v47 = vmin.f32 %v1905_v30, 0.0  ;;  %v710_v10 = vadd.f32 %v708_v6, %v653_v4 }
  0x7a   : > { %v765_v63 = vmul.f32 %v764_v44, %v1918_v40  ;;  %v783_v18 = vadd.f32 %v781_v46, %v776_v61  ;;  %v787_v9 = vmul.f32 %v1648_v21, %v785_v0  ;;  %vm802_vm7 = vcmp.gt.f32.partialorder %v1865_v51, 0.0 }
  0x7b   : > { %v538_v17 = vmul.f32 %v536_v38, %v1923_v41  ;;  %v694_v37 = vmul.f32 1.442695, %v691_v47  ;;  %v744_v52 = vadd.f32 %v742_v39, %v738_v42  ;;  %v1944_v56 = vsel %vm575_vm6, %v1845_v31, %v1132_v12 }
  0x7c   : > { %v1298_v15 = vpop.eup %1297  ;;  %v789_v61 = vadd.f32 %v787_v9, %v783_v18  ;;  %v793_v21 = vmul.f32 %v791_v3, %v1671_v36  ;;  %v799_v0 = vmul.f32 %v1687_v43, %v797_v20  ;;  %v821_v54 = vstv %s1896_s1 }
  0x7d   : > { %v1171_v53 = vadd.f32 -1.0, %v1298_v15  ;;  %1301 = vpow2.f32 %v694_v37  ;;  %v767_v38 = vadd.f32 %v765_v63, %v710_v10  ;;  %v748_v55 = vmin.f32 %v744_v52, 0.0 }
  0x7e   : > { %v795_v57 = vadd.f32 %v793_v21, %v789_v61  ;;  %v542_v26 = vstv %s1907_s0  ;;  %v540_v36 = vadd.f32 %v538_v17, %v471_v34  ;;  %v595_v43 = vmul.f32 %v593_v48, %v1944_v56 }
  0x7f   : > { %v1300_v31 = vpop.eup %1299  ;;  %v1959_v59 = vsel %vm802_vm7, %v1865_v51, %v1171_v53  ;;  %vm632_vm8 = vcmp.gt.f32.partialorder %v1887_v14, 0.0  ;;  %v751_v2 = vmul.f32 1.442695, %v748_v55  ;;  %v474_v5 = vstv %s1927_s2 }
  0x80   : > { %v822_v3 = vmul.f32 %v821_v54, %v1959_v59  ;;  %v1142_v20 = vadd.f32 -1.0, %v1300_v31  ;;  %v801_v62 = vadd.f32 %v799_v0, %v795_v57  ;;  %v543_v7 = vmul.f32 %v542_v26, %v1781_v35 }
  0x81   : > { %1303 = vpow2.f32 %v751_v2  ;;  %v599_v51 = vstv %s1937_s6  ;;  %v597_v1 = vadd.f32 %v595_v43, %v540_v36  ;;  %vm689_vm9 = vcmp.gt.f32.partialorder %v1905_v30, 0.0  ;;  %s1387_s6 = scalar_lea.hbm %s2081_s7, 96 }
  0x82   : > { %v1972_v45 = vadd.f32 %v822_v3, %v767_v38  ;;  %v1975_v34 = vsel %vm632_vm8, %v1887_v14, %v1142_v20  ;;  %v805_v16 = vmin.f32 %v801_v62, 0.0  ;;  %v545_v28 = vadd.f32 %v543_v7, %v474_v5 }
  0x83   : > { %v1302_v48 = vpop.eup %1301  ;;  %v652_v13 = vmul.f32 %v650_v49, %v1975_v34  ;;  %v600_v14 = vmul.f32 %v599_v51, %v1811_v58  ;;  %v656_v4 = vstv %s1954_s5  ;;  %vm746_vm10 = vcmp.gt.f32.partialorder %v744_v52, 0.0 }
  0x84   : > { %871 = vxpose.xlu2.b32.start [1/2] (short) (narrow) %v1972_v45, 16  ;;  %v1152_v23 = vadd.f32 -1.0, %v1302_v48  ;;  %v808_v19 = vmul.f32 1.442695, %v805_v16  ;;  %v544_v33 = vmul.f32 %v542_v26, %v1923_v41  ;;  %v657_v24 = vmul.f32 %v656_v4, %v1860_v11 }
  0x85   : > { %v654_v25 = vadd.f32 %v652_v13, %v597_v1  ;;  %v602_v27 = vadd.f32 %v600_v14, %v545_v28  ;;  %v713_v29 = vstv %s1978_s25  ;;  %vm803_vm11 = vcmp.gt.f32.partialorder %v801_v62, 0.0 }
  0x86   : > { %v1987_v50 = vsel %vm689_vm9, %v1905_v30, %v1152_v23  ;;  %1305 = vpow2.f32 %v808_v19  ;;  %v1447_v30 = vmov 0   ;;  %v546_v46 = vadd.f32 %v544_v33, %v474_v5 }
  0x87   : > { %v709_v49 = vmul.f32 %v707_v60, %v1987_v50  ;;  %v1304_v22 = vpop.eup %1303  ;;  %1281 = vset.pattern.permute.xlu1 %v1447_v30  ;;  %v601_v47 = vmul.f32 %v599_v51, %v1944_v56  ;;  %v659_v42 = vadd.f32 %v657_v24, %v602_v27  ;;  %v714_v10 = vmul.f32 %v713_v29, %v1883_v8 }
  0x88   : > { %v1162_v6 = vadd.f32 -1.0, %v1304_v22  ;;  %v770_v18 = vstv %s1990_s26  ;;  %v658_v37 = vmul.f32 %v656_v4, %v1975_v34  ;;  %v827_v21 = vstv %s1175_s10 }
  0x89   : > { %v711_v32 = vadd.f32 %v709_v49, %v654_v25  ;;  %v716_v15 = vadd.f32 %v714_v10, %v659_v42  ;;  %v771_v61 = vmul.f32 %v770_v18, %v1918_v40  ;;  %v715_v53 = vmul.f32 %v713_v29, %v1987_v50 }
  0x8a   : > { %v1998_v39 = vsel %vm746_vm10, %v744_v52, %v1162_v6  ;;  %v828_v55 = vmul.f32 %v827_v21, %v1959_v59  ;;  %v468_v7 = vstv %s467_s30  ;;  %v587_v51 = vstv %s1133_s22 }
  0x8b   : > { %v766_v60 = vmul.f32 %v764_v44, %v1998_v39  ;;  %v603_v44 = vadd.f32 %v601_v47, %v546_v46  ;;  %v773_v38 = vadd.f32 %v771_v61, %v716_v15  ;;  %v772_v26 = vmul.f32 %v770_v18, %v1998_v39  ;;  %v1282_v47 = vld [vmem:[%s1603_s21] ss:$0 sm:$0xff]  ;;  %s1195_s21 = smul.u32 48, %s1511_s28 }
  0x8c   : > { %v1306_v12 = vpop.eup %1305  ;;  %v588_v1 = vmul.f32 %v587_v51, %v1811_v58  ;;  %v644_v13 = vstv %s1143_s20  ;;  %v701_v28 = vstv %s1153_s4  ;;  %v589_v4 = vmul.f32 %v587_v51, %v1944_v56 }
  0x8d   : > { %v1172_v63 = vadd.f32 -1.0, %v1306_v12  ;;  %v768_v9 = vadd.f32 %v766_v60, %v711_v32  ;;  %v660_v57 = vadd.f32 %v658_v37, %v603_v44  ;;  %v830_v31 = vadd.f32 %v828_v55, %v773_v38  ;;  %s961_s8 = scalar_lea.hbm %s2081_s7, %s1195_s21 }
  0x8e   : > { %v645_v19 = vmul.f32 %v644_v13, %v1860_v11  ;;  %v758_v49 = vstv %s1163_s23  ;;  %v646_v22 = vmul.f32 %v644_v13, %v1975_v34  ;;  %v815_v27 = vstv %s1173_s29  ;;  %s964_s16 = sshll.u32 %s961_s8, 4  ;;  %s965_s16 = int_to_ptr.hbm [resolvable:$true] %s964_s16 }
  0x8f   : > { %v813_v17 = vsel %vm803_vm11, %v801_v62, %v1172_v63  ;;  %v717_v36 = vadd.f32 %v715_v53, %v660_v57  ;;  %v530_v62 = vstv %s529_s3  ;;  %v759_v58 = vmul.f32 %v758_v49, %v1918_v40  ;;  %s1381_s28 = sshra.s32 %s965_s16, 4  ;;  %s1382_s28 = int_to_ptr.hbm [resolvable:$true] %s1381_s28 }
  0x90   : > { %v823_v52 = vmul.f32 %v821_v54, %v813_v17  ;;  %v829_v54 = vmul.f32 %v827_v21, %v813_v17  ;;  %v531_v5 = vmul.f32 %v530_v62, %v1781_v35  ;;  %v532_v16 = vmul.f32 %v530_v62, %v1923_v41  ;;  %s1383_s1 = scalar_lea.hbm %s1382_s28, 48  ;;  %p1388_p7 = scmp.lt.s32.totalorder %s1382_s28, %s2081_s7 }
  0x91   : > { %v774_v43 = vadd.f32 %v772_v26, %v717_v36  ;;  %v702_v35 = vmul.f32 %v701_v28, %v1883_v8  ;;  %v703_v41 = vmul.f32 %v701_v28, %v1987_v50  ;;  %v816_v24 = vmul.f32 %v815_v27, %v1959_v59  ;;  %p1384_p3 = scmp.ne.s32.totalorder %s1382_s28, %s1383_s1  ;;  %p1389_p8 = scmp.lt.s32.totalorder %s1387_s6, %s1383_s1 }
  0x92   : > { %v2010_v0 = vadd.f32 %v823_v52, %v768_v9  ;;  %v533_v48 = vadd.f32 %v531_v5, %v468_v7  ;;  %v534_v14 = vadd.f32 %v532_v16, %v468_v7  ;;  %v760_v56 = vmul.f32 %v758_v49, %v1998_v39 }
  0x93   : > { %v2016_v3 = vadd.f32 %v829_v54, %v774_v43  ;;  %v817_v32 = vmul.f32 %v815_v27, %v813_v17  ;;  %p1385_p4 = pnand %p1384_p3, %p1533_p6  ;;  %p1390_p9 = por %p1389_p8, %p1388_p7 }
  0x94   : > { %872 = vxpose.xlu2.b32.end [2/2] (short) (narrow) %v2010_v0, 16  ;;  %v590_v23 = vadd.f32 %v588_v1, %v533_v48  ;;  %v591_v6 = vadd.f32 %v589_v4, %v534_v14 }
  0x95   : > { %p1386_p5 = pneg %p1385_p4 }
  0x96   : > { %v647_v25 = vadd.f32 %v645_v19, %v590_v23 }
  0x97   : > { %p1391_p11 = pnand %p1390_p9, %p1386_p5 }
  0x98   : > { %v704_v33 = vadd.f32 %v702_v35, %v647_v25 }
  0x9a   : > { %v761_v11 = vadd.f32 %v759_v58, %v704_v33 }
  0x9c   : > { %910 = vxpose.xlu2.b32.start [1/2] (short) (narrow) %v830_v31, 16  ;;  %v818_v29 = vadd.f32 %v816_v24, %v761_v11 }
  0xa4   : > { %911 = vxpose.xlu2.b32.end [2/2] (short) (narrow) %v2016_v3, 16 }
  0xb2   : > { %1280 = vset.pattern.permute.xlu0 %v1447_v30  ;;  %v648_v30 = vadd.f32 %v646_v22, %v591_v6 }
  0xb4   : > { %v705_v8 = vadd.f32 %v703_v41, %v648_v30 }
  0xb6   : > { %v762_v34 = vadd.f32 %v760_v56, %v705_v8 }
  0xb8   : > { %v819_v60 = vadd.f32 %v817_v32, %v762_v34 }
  0xef   : > { %v436_v20 = vpop.trf.xlu0 }
  0xf0   : > { %454 = vperm.xlu0 %1280, %v436_v20  }
  0xf7   : > { %v437_v2 = vpop.trf.xlu0 }
  0xf8   : > { %459 = vperm.xlu1 %1281, %v437_v2  }
 0x125   : > { %v887_v40 = vpop.trf.xlu2 }
 0x126   : > { %v903_v50 = vadd.f32 %v887_v40, %v1972_v45 }
 0x12d   : > { %832 = vxpose.xlu1.b32.start [1/2] (short) (narrow) %v818_v29, 16  ;;  %v888_v46 = vpop.trf.xlu2 }
 0x12e   : > { %v904_v9 = vadd.f32 %v888_v46, %v2010_v0 }
 0x135   : > { %833 = vxpose.xlu1.b32.end [2/2] (short) (narrow) %v819_v60, 16  ;;  %v926_v12 = vpop.trf.xlu2 }
 0x136   : > { %v942_v42 = vadd.f32 %v926_v12, %v830_v31 }
 0x13d   : > { %v927_v18 = vpop.trf.xlu2 }
 0x13e   : > { %v943_v17 = vadd.f32 %v927_v18, %v2016_v3 }
 0x162   : > { %v455_v10 = vpop.permute.xlu0 %454 }
 0x163   : > { %v465_v59 = vmul.f32 %v1282_v47, %v455_v10 }
 0x165   : > { %v905_v39 = vmul.f32 %v903_v50, %v465_v59  ;;  %v944_v63 = vmul.f32 %v942_v42, %v465_v59 }
 0x167   : > { %1176 = vst.msk [vmem:[%s410_s15 + $0x10] sm:$0xff] %vm868_vm12, %v905_v39 }
 0x168   : > { %1178 = vst.msk [vmem:[%s410_s15 + $0x20] sm:$0xff] %vm868_vm12, %v944_v63 }
 0x16a   : > { %v460_v37 = vpop.permute.xlu1 %459 }
 0x16b   : > { %v466_v52 = vmul.f32 %v1282_v47, %v460_v37 }
 0x16d   : > { %v906_v45 = vmul.f32 %v904_v9, %v466_v52  ;;  %v945_v15 = vmul.f32 %v943_v17, %v466_v52 }
 0x16f   : > { %1177 = vst.msk [vmem:[%s410_s15 + $0x18] sm:$0xff] %vm868_vm12, %v906_v45 }
 0x170   : > { %1179 = vst.msk [vmem:[%s410_s15 + $0x28] sm:$0xff] %vm868_vm12, %v945_v15 }
 0x1d1   : > { %v848_v61 = vpop.trf.xlu1 }
 0x1d2   : > { %v864_v44 = vadd.f32 %v848_v61, %v818_v29 }
 0x1d4   : > { %v866_v21 = vmul.f32 %v864_v44, %v465_v59 }
 0x1d6   : > { %869 = vst.msk [vmem:[%s410_s15] sm:$0xff] %vm868_vm12, %v866_v21 }
 0x1d9   : > { %v849_v0 = vpop.trf.xlu1 }
 0x1da   : > { %v865_v53 = vadd.f32 %v849_v0, %v819_v60 }
 0x1dc   : > { %v867_v38 = vmul.f32 %v865_v53, %v466_v52 }
 0x1de   : > { %870 = vst.msk [vmem:[%s410_s15 + $0x8] sm:$0xff] %vm868_vm12, %v867_v38 }
 0x1df   : > { %1394 = shalt.err (!%p1391_p11)
}
 0x1e0   : > { %s1448_s11 = smov 128   ;;  %s1449_s26 = smov 8  }
 0x1e1   : > { %1212 = dma.vmem_to_hbm [thread:$0]  (%p1533_p6), %s963_s9, 768, %s965_s16, %s950_s17, %s1448_s11, %s1448_s11, %s1449_s26  }
 0x1e2 PF: > { %s979_s10 = sand.u32 1, %s1429_s24   ;;  %p1228_p12 = pnand %p1101_p1, %p1539_p10 }
 0x1e3   : > { %s980_s3 = scalar_lea.sflag [#allocation4], %s979_s10 }
 0x1e4   : > { %p1229_p13 = pneg %p1228_p12 }
 0x1e6   : > { %1424 = dma.done.wait (%p1229_p13), %s980_s3, 768  }
 0x1e7   : > { %1426 = vsyncadd (%p1229_p13), %s980_s3, 4294966528  ;;  %s2108_s27 = sld [smem:[#allocation18_spill]] }
 0x1e8   : > { %s2109_s24 = sld [smem:[#allocation16_spill]] }
 0x1e9   : > { %s2110_s25 = sld [smem:[#allocation17_spill]] }
 0x1ea   : > { %s2111_s26 = sld [smem:[#allocation19_spill]] }
 0x1ed   : > { %p20_p0 = scmp.ge.s32.totalorder %s2108_s27, 4  }
 0x1ef   :  { %22 = sbr.rel (!%p20_p0) target bundleno = 14 (0xe), region = 156 }
 0x1f4   :  { %986 = vsyncpa [#allocation4], 1 }
 0x1f5   :  { %988 = vsyncpa [#allocation4 + $0x1], 1 }
 0x1f6   :  { %989 = vsyncpa [#allocation5], 1 }
 0x1f7   :  { %991 = vsyncpa [#allocation5 + $0x1], 1 }
 0x1f8   :  { %992 = vsyncpa [#allocation7], 1 }
 0x1f9   :  { %993 = vsyncpa [#allocation10], 1 }

// kernel: attention_layer_forward.2
= control target key start
LH: loop header
LB: loop body
LE: loop exit
PB: predicated region body
PF: predicated region fallthrough
CT: control target
= control target key end

     0   :  { %s1818_s30 = smov 0   ;;  %s1820_s10 = smov 0   ;;  %s2169_s0 = inlined_call_operand.vmem [shape: f32[2,2,16,16], index: 0, kind: input, shape index: {}]   ;;  %s2170_s1 = inlined_call_operand.vmem [shape: bf16[2,2,16,40], index: 1, kind: input, shape index: {}]   ;;  %s2171_s2 = inlined_call_operand.vmem [shape: f32[2,1,40], index: 2, kind: input, shape index: {}]   ;;  %s2172_s3 = inlined_call_operand.vmem [shape: f32[2,16,1], index: 3, kind: input, shape index: {}]   ;;  %s2173_s4 = inlined_call_operand.vmem [shape: bf16[2,8,6], index: 4, kind: input, shape index: {}]   ;;  %s2174_s5 = inlined_call_operand.vmem [shape: f32[1,6], index: 5, kind: input, shape index: {}]   ;;  %s2175_s6 = inlined_call_operand.vmem [shape: f32[6,8], index: 6, kind: input, shape index: {}]   ;;  %s2176_s7 = inlined_call_operand.vmem [shape: f32[1,8], index: 7, kind: input, shape index: {}]   ;;  %s2177_s8 = inlined_call_operand.vmem [shape: bf16[2,2,16,16], index: 8, kind: output, shape index: {0}]   ;;  %s2178_s9 = inlined_call_operand.vmem [shape: f32[2,16,8], index: 9, kind: output, shape index: {1}]  }
   0x1   :  { %2182 = sst [smem:[#allocation8_spill]] %s2174_s5  ;;  %s1822_s11 = smov 0  }
   0x2   :  { %2183 = sst [smem:[#allocation9_spill]] %s2176_s7  ;;  %s1824_s12 = smov 0  }
   0x3   :  { %s1826_s13 = smov 0  }
   0x4 LB: > { %2184 = sst [smem:[#allocation3_spill]] %s1749_s11  ;;  %s29_s14 = sadd.s32 1, %s1749_s11  ;;  %s1757_s13 = sphi %s1826_s13, %s20_s13   ;;  %s1753_s12 = sphi %s1824_s12, %s2195_s12   ;;  %s1749_s11 = sphi %s1822_s11, %s2194_s11   ;;  %s1745_s10 = sphi %s1820_s10, %s2193_s10   ;;  %s1741_s30 = sphi %s1818_s30, %s2192_s30  }
   0x5   : > { %2185 = sst [smem:[#allocation4_spill]] %s1753_s12  ;;  %s32_s15 = sadd.s32 1, %s1753_s12 }
   0x6   : > { %2186 = sst [smem:[#allocation5_spill]] %s1757_s13  ;;  %p30_p0 = scmp.ge.s32.totalorder %s29_s14, 2 }
   0x7   : > { %p1562_p1 = scmp.ge.s32.totalorder %s1757_s13, 1  ;;  %p353_p2 = scmp.lt.s32.totalorder %s1757_s13, 5 }
   0x8   : > { %s2197_s14 = smov (%p30_p0, %s29_s14), 0  ;;  %s2199_s15 = smov (!%p30_p0, %s32_s15), %s1753_s12 }
   0x9   : > { %2187 = sst [smem:[#allocation6_spill]] %s2197_s14  ;;  %p354_p3 = pnand %p1562_p1, %p353_p2 }
   0xa   : > { %p34_p4 = scmp.ge.s32.totalorder %s2199_s15, 2  ;;  %p423_p5 = scmp.lt.s32.totalorder (!%p354_p3), %s1745_s10, 1 }
   0xb   : > { %357 = sbr.rel (%p354_p3) target bundleno = 1093 (0x445), region = 52  ;;  %p425_p6 = scmp.lt.s32.totalorder (!%p354_p3), %s1741_s30, 1 }
   0xc   : > { %s2201_s15 = smov (%p34_p4, %s2199_s15), 0  ;;  %p1577_p7 = scmp.ne.s32.totalorder (!%p354_p3), %s1741_s30, 0 }
   0xd   : > { %2188 = sst [smem:[#allocation7_spill]] %s2201_s15 }
  0x10   : > { %s2203_s10 = smov (!%p423_p5, %s1745_s10), 1 }
  0x11   : > { %s1852_s16 = scalar_select %p425_p6, %s1741_s30, 1 }
  0x12   : > { %s1564_s17 = sshll.u32 %s2203_s10, 2  ;;  %s1566_s18 = sshll.u32 %s2203_s10, 1 }
  0x13   : > { %s1563_s19 = sshll.u32 %s1852_s16, 1  ;;  %s1567_s20 = sshll.u32 %s1852_s16, 2 }
  0x14   : > { %s429_s21 = sadd.s32 %s1564_s17, %s1563_s19  ;;  %s438_s22 = sadd.s32 %s1567_s20, %s1566_s18 }
  0x15   : > { %s1565_s23 = sshll.u32 %s429_s21, 3  ;;  %s1568_s24 = sshll.u32 %s438_s22, 2 }
  0x16   : > { %s431_s27 = scalar_lea.vmem %s2169_s0, %s1565_s23  ;;  %s1862_s15 = scalar_lea.vmem %s2170_s1, %s1568_s24 }
  0x17   : > { %s443_s11 = scalar_lea.vmem %s2171_s2, %s1852_s16  ;;  %s1596_s13 = sshll.u32 %s2203_s10, 4 }
  0x18   : > { %s1871_s17 = scalar_lea.vmem %s2172_s3, %s1596_s13  ;;  %s1876_s21 = scalar_lea.vmem %s2173_s4, %s1567_s20 }
  0x19   : > { %s1881_s25 = scalar_lea.vmem %s2177_s8, %s1568_s24  ;;  %s1886_s12 = scalar_lea.vmem %s2178_s9, %s1596_s13 }
  0x1a   : > { %471 = sbr.rel (%p1577_p7) target bundleno = 34 (0x22), region = 56 }
  0x1f   : > { %vm472_vm0 = vcmask 48128   ;;  %v1759_v0 = vmov 0.0  }
  0x20   : > { %473 = vst.msk [vmem:[#allocation2] sm:$0xff] %vm472_vm0, %v1759_v0 }
  0x21   : > { %474 = vst.msk [vmem:[#allocation2 + $0x8] sm:$0xff] %vm472_vm0, %v1759_v0 }
  0x22 PF: > { %v477_v1 = vlaneseq  ;;  %v475_v2 = vld [vmem:[%s431_s27] sm:$0xff]  ;;  %vm486_vm1 = vcmask 130048   ;;  %v476_v5 = vld [vmem:[%s431_s27 + $0x8] sm:$0xff]  ;;  %s1760_s10 = smov 112   ;;  %s1761_s13 = smov 124   ;;  %vm588_vm13 = vcmask 1047556  }
  0x23   : > { %v1598_v19 = vld [vmem:[%s1862_s15] sm:$0xff]  ;;  %s1762_s14 = smov 120   ;;  %s1763_s15 = smov 116   ;;  %v1764_v56 = vmov 1983009808   ;;  %vm1078_vm14 = vcmask 31744  }
  0x24   : > { %v478_v3 = vshrl.u32 %v477_v1, 7  ;;  %v481_v4 = vand.u32 127, %v477_v1  ;;  %560 = vmatpush.bf16.msra.mxu0 %v1598_v19  ;;  %v1685_v51 = vld [vmem:[%s443_s11] ss:$0 sm:$0xff]  ;;  %v593_v57 = vunpack.c.l.s4 %v1764_v56  ;;  %s1766_s11 = smov 96   ;;  %vm1273_vm15 = vcmask 1043456  }
  0x25   : > { %vm1269_vm0 = vcmask 64512   ;;  %p1588_p8 = scmp.ne.s32.totalorder %s1741_s30, 1 }
  0x26   : > { %vm482_vm2 = vcmp.eq.s32.totalorder %v478_v3, %v481_v4  ;;  %v479_v6 = vadd.s32 8, %v478_v3  ;;  %s2189_s29 = sld [smem:[#allocation8_spill]] (!%p1588_p8) }
  0x27   : > { %v484_v7 = vsel %vm482_vm2, 1.0, %v475_v2  ;;  %vm1293_vm2 = vcmask 48128   ;;  %s2190_s18 = sld [smem:[#allocation9_spill]] (!%p1588_p8) }
  0x28   : > { %v487_v8 = vsel %vm486_vm1, %v484_v7, 0.0  ;;  %vm483_vm3 = vcmp.eq.s32.totalorder %v479_v6, %v481_v4  ;;  %v1907_v4 = vunpack.c.0.s8 %v593_v57 }
  0x29   : > { %488 = vadd.xlane.f32.xlu0 %v487_v8  ;;  %v485_v9 = vsel %vm483_vm3, 1.0, %v476_v5  ;;  %vm1259_vm3 = vcmask 125952  }
  0x2a   : > { %v490_v10 = vsel %vm486_vm1, %v485_v9, 0.0 }
  0x2b   : > { %v495_v11 = vadd.f32 %v490_v10, %v487_v8  ;;  %v1765_v8 = vmov 1934713408  }
  0x2d   : > { %v496_v12 = vrot.slane %v495_v11, 4 }
  0x2f   : > { %v497_v13 = vadd.f32 %v496_v12, %v495_v11 }
  0x31   : > { %491 = vadd.xlane.f32.xlu0 %v490_v10  ;;  %v498_v14 = vrot.slane %v497_v13, 2 }
  0x33   : > { %v499_v15 = vadd.f32 %v498_v14, %v497_v13 }
  0x35   : > { %v500_v16 = vrot.slane %v499_v15, 1 }
  0x37   : > { %v501_v17 = vadd.f32 %v500_v16, %v499_v15 }
  0x39   : > { %v502_v18 = vmax.f32 %v501_v17, 1.0 }
  0x3b   : > { %1686 = vrsqrt.f32 %v502_v18  ;;  %vm531_vm6 = vweird.f32 %v502_v18 }
  0x41   : > { %v1687_v22 = vpop.eup %1686 }
  0x42   : > { %v526_v23 = vmul.f32 %v1687_v22, %v502_v18  ;;  %vm532_vm7 = vweird.f32 %v1687_v22 }
  0x43   : > { %vm533_vm10 = vmor %vm531_vm6, %vm532_vm7 }
  0x44   : > { %v527_v29 = vmul.f32 %v1687_v22, %v526_v23 }
  0x46   : > { %v528_v32 = vmul.f32 0.5, %v527_v29 }
  0x48   : > { %v529_v37 = vsub.f32 1.5, %v528_v32 }
  0x4a   : > { %v530_v41 = vmul.f32 %v1687_v22, %v529_v37 }
  0x4c   : > { %v534_v45 = vsel %vm533_vm10, %v1687_v22, %v530_v41 }
  0x9c   : > { %v489_v20 = vpop.xlane.xlu0 %488 }
  0x9d   : > { %v493_v21 = vmax.f32 %v489_v20, 1.0 }
  0x9f   : > { %1688 = vrsqrt.f32 %v493_v21  ;;  %vm509_vm5 = vweird.f32 %v493_v21 }
  0xa4   : > { %v492_v24 = vpop.xlane.xlu0 %491 }
  0xa5   : > { %v1689_v25 = vpop.eup %1688  ;;  %v494_v26 = vmax.f32 %v492_v24, 1.0 }
  0xa6   : > { %v504_v27 = vmul.f32 %v1689_v25, %v493_v21  ;;  %vm510_vm4 = vweird.f32 %v1689_v25 }
  0xa7   : > { %1690 = vrsqrt.f32 %v494_v26  ;;  %vm511_vm8 = vmor %vm509_vm5, %vm510_vm4  ;;  %vm519_vm11 = vweird.f32 %v494_v26 }
  0xa8   : > { %v505_v28 = vmul.f32 %v1689_v25, %v504_v27 }
  0xaa   : > { %v506_v30 = vmul.f32 0.5, %v505_v28 }
  0xac   : > { %v507_v31 = vsub.f32 1.5, %v506_v30 }
  0xad   : > { %v1691_v33 = vpop.eup %1690 }
  0xae   : > { %v514_v34 = vmul.f32 %v1691_v33, %v494_v26  ;;  %v508_v35 = vmul.f32 %v1689_v25, %v507_v31  ;;  %vm520_vm9 = vweird.f32 %v1691_v33 }
  0xaf   : > { %vm521_vm12 = vmor %vm519_vm11, %vm520_vm9 }
  0xb0   : > { %v515_v36 = vmul.f32 %v1691_v33, %v514_v34  ;;  %v512_v39 = vsel %vm511_vm8, %v1689_v25, %v508_v35 }
  0xb1   : > { %v523_v43 = vmul.f32 %v512_v39, %v484_v7 }
  0xb2   : > { %v516_v38 = vmul.f32 0.5, %v515_v36 }
  0xb3   : > { %v535_v47 = vmul.f32 %v534_v45, %v523_v43 }
  0xb4   : > { %v517_v40 = vsub.f32 1.5, %v516_v38 }
  0xb6   : > { %v518_v42 = vmul.f32 %v1691_v33, %v517_v40 }
  0xb8   : > { %v522_v44 = vsel %vm521_vm12, %v1691_v33, %v518_v42 }
  0xb9   : > { %v524_v46 = vmul.f32 %v522_v44, %v485_v9  ;;  %v617_v9 = vunpack.c.l.s4 %v1765_v8 }
  0xbb   : > { %v536_v48 = vmul.f32 %v534_v45, %v524_v46  ;;  %v1920_v20 = vunpack.c.0.s8 %v617_v9 }
  0xbd   : > { %v537_v49 = vpack.c.bf16 %v536_v48, %v535_v47 }
  0xbf   : > { %1582 = vmatmul.msk.bf16.vlgmr.msra.gmra.mxu0 %vm486_vm1, %v537_v49 }
 0x13c   : > { %v562_v50 = vpop.f32.mrf.mxu0 }
 0x13d   : > { %v1898_v53 = vadd.f32 %v1685_v51, %v562_v50 }
 0x13f   : > { %v590_v62 = vrot.slane %v1898_v53, 4 }
 0x144   : > { %v564_v52 = vpop.f32.mrf.mxu0 }
 0x145   : > { %v1900_v54 = vadd.f32 %v1685_v51, %v564_v52 }
 0x147   : > { %v1670_v55 = vpack.i.bf16 %v1900_v54, %v1898_v53  ;;  %v646_v63 = vrot.slane %v1900_v54, 4  ;;  %v1262_v39 = vpack.c.bf16 %v1900_v54, %v1898_v53 }
 0x149   : > { %1671 = vrot.lane.b32.xlu0 %v1670_v55, %s1760_s10  ;;  %1661 = vrot.lane.b32.xlu2 %v1670_v55, %s1761_s13 }
 0x14a   : > { %1651 = vrot.lane.b32.xlu1 %v1670_v55, %s1762_s14 }
 0x152   : > { %1656 = vrot.lane.b32.xlu1 %v1670_v55, %s1763_s15 }
 0x1a3   : > { %v1662_v59 = vpop.permute.xlu2 %1661 }
 0x1a4   : > { %v1664_v2 = vunpack.i.h.bf16 %v1662_v59  ;;  %v1663_v3 = vunpack.i.l.bf16 %v1662_v59 }
 0x1a6   : > { %v658_v11 = vrot.slane %v1664_v2, 4  ;;  %v602_v12 = vrot.slane %v1663_v3, 4 }
 0x1bc   : > { %v1652_v58 = vpop.permute.xlu1 %1651 }
 0x1bd   : > { %v1654_v60 = vunpack.i.h.bf16 %v1652_v58  ;;  %v1653_v61 = vunpack.i.l.bf16 %v1652_v58  ;;  %1666 = vrot.lane.b32.xlu2 %v1652_v58, %s1760_s10 }
 0x1bf   : > { %v644_v0 = vrot.slane %v1654_v60, 4  ;;  %v587_v1 = vrot.slane %v1653_v61, 4  ;;  %v647_v5 = vsel %vm588_vm13, %v1654_v60, %v646_v63  ;;  %v591_v7 = vsel %vm588_vm13, %v1653_v61, %v590_v62 }
 0x1c0   : > { %v655_v13 = vperm.slane %v647_v5, %v1907_v4  ;;  %v599_v16 = vperm.slane %v591_v7, %v1907_v4 }
 0x1c1   : > { %v589_v6 = vsel %vm588_vm13, %v587_v1, %v1898_v53  ;;  %v645_v10 = vsel %vm588_vm13, %v644_v0, %v1900_v54 }
 0x1c2   : > { %v595_v15 = vperm.slane %v589_v6, %v1907_v4  ;;  %v651_v19 = vperm.slane %v645_v10, %v1907_v4  ;;  %v682_v25 = vrot.slane %v655_v13, 4  ;;  %v626_v29 = vrot.slane %v599_v16, 4 }
 0x1c4   : > { %v1657_v14 = vpop.permute.xlu1 %1656  ;;  %v614_v28 = vrot.slane %v595_v15, 4  ;;  %v670_v36 = vrot.slane %v651_v19, 4 }
 0x1c5   : > { %v1659_v17 = vunpack.i.h.bf16 %v1657_v14  ;;  %v1658_v18 = vunpack.i.l.bf16 %v1657_v14  ;;  %1676 = vrot.lane.b32.xlu1 %v1657_v14, %s1760_s10  ;;  %1681 = vrot.lane.b32.xlu2 %v1662_v59, %s1760_s10 }
 0x1c7   : > { %v656_v21 = vrot.slane %v1659_v17, 4  ;;  %v659_v22 = vsel %vm588_vm13, %v1659_v17, %v658_v11  ;;  %v600_v23 = vrot.slane %v1658_v18, 4  ;;  %v603_v24 = vsel %vm588_vm13, %v1658_v18, %v602_v12 }
 0x1c8   : > { %v667_v26 = vperm.slane %v659_v22, %v1907_v4  ;;  %v611_v27 = vperm.slane %v603_v24, %v1907_v4 }
 0x1c9   : > { %v657_v30 = vsel %vm588_vm13, %v656_v21, %v1664_v2  ;;  %v601_v31 = vsel %vm588_vm13, %v600_v23, %v1663_v3 }
 0x1ca   : > { %v663_v32 = vperm.slane %v657_v30, %v1907_v4  ;;  %v680_v33 = vrot.slane %v667_v26, 4  ;;  %v607_v34 = vperm.slane %v601_v31, %v1907_v4  ;;  %v624_v35 = vrot.slane %v611_v27, 4 }
 0x1cb   : > { %v627_v37 = vsel %vm588_vm13, %v611_v27, %v626_v29  ;;  %v683_v38 = vsel %vm588_vm13, %v667_v26, %v682_v25 }
 0x1cc   : > { %v668_v40 = vrot.slane %v663_v32, 4  ;;  %v612_v41 = vrot.slane %v607_v34, 4  ;;  %v615_v42 = vsel %vm588_vm13, %v607_v34, %v614_v28  ;;  %v625_v43 = vsel %vm588_vm13, %v624_v35, %v599_v16 }
 0x1cd   : > { %v623_v44 = vperm.slane %v615_v42, %v1920_v20  ;;  %v631_v45 = vperm.slane %v625_v43, %v1920_v20  ;;  %v635_v46 = vperm.slane %v627_v37, %v1920_v20  ;;  %v671_v47 = vsel %vm588_vm13, %v663_v32, %v670_v36  ;;  %1267 = vrot.lane.b32.xlu1 %v1262_v39, %s1766_s11 }
 0x1ce   : > { %v613_v48 = vsel %vm588_vm13, %v612_v41, %v595_v15  ;;  %v669_v49 = vsel %vm588_vm13, %v668_v40, %v651_v19  ;;  %v679_v50 = vperm.slane %v671_v47, %v1920_v20  ;;  %v681_v51 = vsel %vm588_vm13, %v680_v33, %v655_v13 }
 0x1cf   : > { %v619_v52 = vperm.slane %v613_v48, %v1920_v20  ;;  %v638_v53 = vrot.slane %v623_v44, 4  ;;  %v640_v54 = vrot.slane %v631_v45, 4  ;;  %v642_v55 = vrot.slane %v635_v46, 4 }
 0x1d0   : > { %v675_v56 = vperm.slane %v669_v49, %v1920_v20  ;;  %v687_v57 = vperm.slane %v681_v51, %v1920_v20  ;;  %v691_v58 = vperm.slane %v683_v38, %v1920_v20  ;;  %v694_v59 = vrot.slane %v679_v50, 4 }
 0x1d1   : > { %v636_v60 = vrot.slane %v619_v52, 4  ;;  %v639_v61 = vsel %vm588_vm13, 0.0, %v638_v53  ;;  %v641_v62 = vsel %vm588_vm13, 0.0, %v640_v54  ;;  %v643_v63 = vsel %vm588_vm13, 0.0, %v642_v55 }
 0x1d2   : > { %v692_v0 = vrot.slane %v675_v56, 4  ;;  %v695_v1 = vsel %vm588_vm13, 0.0, %v694_v59  ;;  %v696_v2 = vrot.slane %v687_v57, 4  ;;  %v698_v3 = vrot.slane %v691_v58, 4 }
 0x1d3   : > { %v705_v5 = vrot.slane %v639_v61, 4  ;;  %v711_v6 = vsel %vm588_vm13, %v642_v55, %v631_v45  ;;  %v716_v7 = vrot.slane %v643_v63, 4  ;;  %v759_v8 = vrot.slane %v695_v1, 4 }
 0x1d4   : > { %v697_v9 = vsel %vm588_vm13, 0.0, %v696_v2  ;;  %v699_v10 = vsel %vm588_vm13, 0.0, %v698_v3  ;;  %v715_v11 = vperm.slane %v711_v6, %v1907_v4  ;;  %v765_v12 = vsel %vm588_vm13, %v698_v3, %v687_v57 }
 0x1d5   : > { %v769_v13 = vperm.slane %v765_v12, %v1907_v4  ;;  %v770_v14 = vrot.slane %v699_v10, 4  ;;  %v637_v15 = vsel %vm588_vm13, 0.0, %v636_v60  ;;  %v693_v16 = vsel %vm588_vm13, 0.0, %v692_v0 }
 0x1d6   : > { %v700_v17 = vsel %vm588_vm13, %v638_v53, %v619_v52  ;;  %v706_v18 = vsel %vm588_vm13, %v705_v5, %v637_v15  ;;  %v717_v19 = vsel %vm588_vm13, %v716_v7, %v641_v62  ;;  %v736_v21 = vrot.slane %v715_v11, 4 }
 0x1d7   : > { %v704_v22 = vperm.slane %v700_v17, %v1907_v4  ;;  %v710_v23 = vperm.slane %v706_v18, %v1907_v4  ;;  %v721_v24 = vperm.slane %v717_v19, %v1907_v4  ;;  %v754_v25 = vsel %vm588_vm13, %v694_v59, %v675_v56 }
 0x1d8   : > { %v758_v26 = vperm.slane %v754_v25, %v1907_v4  ;;  %v760_v27 = vsel %vm588_vm13, %v759_v8, %v693_v16  ;;  %v771_v28 = vsel %vm588_vm13, %v770_v14, %v697_v9  ;;  %v790_v29 = vrot.slane %v769_v13, 4 }
 0x1d9   : > { %v724_v30 = vrot.slane %v704_v22, 4  ;;  %v737_v31 = vsel %vm588_vm13, %v721_v24, %v736_v21  ;;  %v764_v32 = vperm.slane %v760_v27, %v1907_v4  ;;  %v775_v33 = vperm.slane %v771_v28, %v1907_v4 }
 0x1da   : > { %v745_v34 = vperm.slane %v737_v31, %v1920_v20  ;;  %v778_v35 = vrot.slane %v758_v26, 4  ;;  %v722_v36 = vrot.slane %v710_v23, 4  ;;  %v734_v37 = vrot.slane %v721_v24, 4 }
 0x1db   : > { %v725_v38 = vsel %vm588_vm13, %v710_v23, %v724_v30  ;;  %v791_v39 = vsel %vm588_vm13, %v775_v33, %v790_v29  ;;  %v776_v40 = vrot.slane %v764_v32, 4  ;;  %v788_v41 = vrot.slane %v775_v33, 4  ;;  %v1672_v29 = vpop.permute.xlu0 %1671 }
 0x1dc   : > { %v733_v42 = vperm.slane %v725_v38, %v1920_v20  ;;  %v750_v43 = vrot.slane %v745_v34, 4  ;;  %v779_v44 = vsel %vm588_vm13, %v764_v32, %v778_v35  ;;  %v799_v45 = vperm.slane %v791_v39, %v1920_v20 }
 0x1dd   : > { %v787_v46 = vperm.slane %v779_v44, %v1920_v20  ;;  %v723_v47 = vsel %vm588_vm13, %v722_v36, %v704_v22  ;;  %v735_v48 = vsel %vm588_vm13, %v734_v37, %v715_v11  ;;  %v777_v49 = vsel %vm588_vm13, %v776_v40, %v758_v26 }
 0x1de   : > { %v751_v50 = vsel %vm588_vm13, %v750_v43, %v733_v42  ;;  %v752_v51 = vrot.slane %v733_v42, 4  ;;  %v804_v52 = vrot.slane %v799_v45, 4  ;;  %v729_v53 = vperm.slane %v723_v47, %v1920_v20 }
 0x1df   : > { %v806_v54 = vrot.slane %v787_v46, 4  ;;  %v812_v55 = vpack.c.bf16 %v751_v50, %v751_v50  ;;  %v741_v56 = vperm.slane %v735_v48, %v1920_v20  ;;  %v783_v57 = vperm.slane %v777_v49, %v1920_v20 }
 0x1e0   : > { %v805_v58 = vsel %vm588_vm13, %v804_v52, %v787_v46  ;;  %v789_v59 = vsel %vm588_vm13, %v788_v41, %v769_v13  ;;  %v753_v60 = vsel %vm588_vm13, %v745_v34, %v752_v51  ;;  %v748_v61 = vrot.slane %v729_v53, 4 }
 0x1e1   : > { %v813_v62 = vpack.c.bf16 %v805_v58, %v805_v58  ;;  %v1992_v63 = vunpack.c.l.b16 %v812_v55  ;;  %v746_v0 = vrot.slane %v741_v56, 4  ;;  %v795_v1 = vperm.slane %v789_v59, %v1920_v20 }
 0x1e2   : > { %v807_v2 = vsel %vm588_vm13, %v799_v45, %v806_v54  ;;  %v814_v3 = vpack.c.bf16 %v753_v60, %v753_v60  ;;  %v749_v5 = vsel %vm588_vm13, %v741_v56, %v748_v61  ;;  %v802_v6 = vrot.slane %v783_v57, 4 }
 0x1e3   : > { %v1997_v7 = vunpack.c.l.b16 %v813_v62  ;;  %v747_v8 = vsel %vm588_vm13, %v746_v0, %v729_v53  ;;  %v800_v9 = vrot.slane %v795_v1, 4  ;;  %v815_v10 = vpack.c.bf16 %v807_v2, %v807_v2 }
 0x1e4   : > { %v808_v11 = vpack.c.bf16 %v747_v8, %v747_v8  ;;  %v2000_v12 = vunpack.c.l.b16 %v814_v3  ;;  %v803_v13 = vsel %vm588_vm13, %v795_v1, %v802_v6  ;;  %v810_v14 = vpack.c.bf16 %v749_v5, %v749_v5 }
 0x1e5   : > { %v1133_v15 = vpack.c.b16 %v1997_v7, %v1992_v63  ;;  %v801_v16 = vsel %vm588_vm13, %v800_v9, %v783_v57  ;;  %v2006_v17 = vunpack.c.l.b16 %v815_v10  ;;  %v811_v18 = vpack.c.bf16 %v803_v13, %v803_v13 }
 0x1e6   : > { %v809_v19 = vpack.c.bf16 %v801_v16, %v801_v16  ;;  %v2008_v21 = vunpack.c.l.b16 %v808_v11  ;;  %v2010_v22 = vunpack.c.l.b16 %v810_v14  ;;  %v1674_v31 = vunpack.i.h.bf16 %v1672_v29 }
 0x1e7   : > { %v1163_v23 = vpack.c.b16 %v2006_v17, %v2000_v12  ;;  %v2014_v24 = vunpack.c.l.b16 %v811_v18  ;;  %v1673_v32 = vunpack.i.l.bf16 %v1672_v29 }
 0x1e8   : > { %v2016_v25 = vunpack.c.l.b16 %v809_v19  ;;  %v898_v35 = vrot.slane %v1674_v31, 4 }
 0x1e9   : > { %v1103_v26 = vpack.c.b16 %v2014_v24, %v2010_v22  ;;  %v842_v37 = vrot.slane %v1673_v32, 4 }
 0x1ea   : > { %v1072_v27 = vpack.c.b16 %v2016_v25, %v2008_v21 }
 0x217   : > { %v1667_v28 = vpop.permute.xlu2 %1666 }
 0x218   : > { %v1668_v30 = vunpack.i.l.bf16 %v1667_v28  ;;  %v1669_v33 = vunpack.i.h.bf16 %v1667_v28 }
 0x21a   : > { %v840_v34 = vrot.slane %v1668_v30, 4  ;;  %v896_v38 = vrot.slane %v1669_v33, 4  ;;  %v899_v39 = vsel %vm588_vm13, %v1669_v33, %v898_v35  ;;  %v843_v41 = vsel %vm588_vm13, %v1668_v30, %v842_v37 }
 0x21b   : > { %v907_v45 = vperm.slane %v899_v39, %v1907_v4  ;;  %v851_v47 = vperm.slane %v843_v41, %v1907_v4 }
 0x21c   : > { %v841_v40 = vsel %vm588_vm13, %v840_v34, %v1673_v32  ;;  %v897_v44 = vsel %vm588_vm13, %v896_v38, %v1674_v31 }
 0x21d   : > { %v847_v46 = vperm.slane %v841_v40, %v1907_v4  ;;  %v903_v53 = vperm.slane %v897_v44, %v1907_v4  ;;  %v878_v58 = vrot.slane %v851_v47, 4  ;;  %v934_v61 = vrot.slane %v907_v45, 4 }
 0x21f   : > { %v1682_v36 = vpop.permute.xlu2 %1681  ;;  %v866_v62 = vrot.slane %v847_v46, 4  ;;  %v922_v8 = vrot.slane %v903_v53, 4 }
 0x220   : > { %v1684_v42 = vunpack.i.h.bf16 %v1682_v36  ;;  %v1683_v43 = vunpack.i.l.bf16 %v1682_v36 }
 0x222   : > { %v910_v49 = vrot.slane %v1684_v42, 4  ;;  %v854_v50 = vrot.slane %v1683_v43, 4 }
 0x237   : > { %v1677_v48 = vpop.permute.xlu1 %1676 }
 0x238   : > { %v1679_v51 = vunpack.i.h.bf16 %v1677_v48  ;;  %v1678_v52 = vunpack.i.l.bf16 %v1677_v48 }
 0x23a   : > { %v908_v54 = vrot.slane %v1679_v51, 4  ;;  %v852_v55 = vrot.slane %v1678_v52, 4  ;;  %v855_v56 = vsel %vm588_vm13, %v1678_v52, %v854_v50  ;;  %v911_v57 = vsel %vm588_vm13, %v1679_v51, %v910_v49 }
 0x23b   : > { %v863_v59 = vperm.slane %v855_v56, %v1907_v4  ;;  %v919_v60 = vperm.slane %v911_v57, %v1907_v4 }
 0x23c   : > { %v853_v0 = vsel %vm588_vm13, %v852_v55, %v1683_v43  ;;  %v909_v1 = vsel %vm588_vm13, %v908_v54, %v1684_v42 }
 0x23d   : > { %v859_v2 = vperm.slane %v853_v0, %v1907_v4  ;;  %v876_v3 = vrot.slane %v863_v59, 4  ;;  %v879_v5 = vsel %vm588_vm13, %v863_v59, %v878_v58  ;;  %v915_v6 = vperm.slane %v909_v1, %v1907_v4 }
 0x23e   : > { %v887_v9 = vperm.slane %v879_v5, %v1920_v20  ;;  %v932_v10 = vrot.slane %v919_v60, 4  ;;  %v935_v11 = vsel %vm588_vm13, %v919_v60, %v934_v61 }
 0x23f   : > { %v864_v13 = vrot.slane %v859_v2, 4  ;;  %v867_v14 = vsel %vm588_vm13, %v859_v2, %v866_v62  ;;  %v877_v16 = vsel %vm588_vm13, %v876_v3, %v851_v47  ;;  %v920_v18 = vrot.slane %v915_v6, 4 }
 0x240   : > { %v875_v19 = vperm.slane %v867_v14, %v1920_v20  ;;  %v883_v28 = vperm.slane %v877_v16, %v1920_v20  ;;  %v894_v29 = vrot.slane %v887_v9, 4  ;;  %v923_v30 = vsel %vm588_vm13, %v915_v6, %v922_v8 }
 0x241   : > { %v865_v31 = vsel %vm588_vm13, %v864_v13, %v847_v46  ;;  %v921_v32 = vsel %vm588_vm13, %v920_v18, %v903_v53  ;;  %v931_v33 = vperm.slane %v923_v30, %v1920_v20  ;;  %v933_v34 = vsel %vm588_vm13, %v932_v10, %v907_v45 }
 0x242   : > { %v871_v35 = vperm.slane %v865_v31, %v1920_v20  ;;  %v890_v36 = vrot.slane %v875_v19, 4  ;;  %v892_v37 = vrot.slane %v883_v28, 4  ;;  %v895_v38 = vsel %vm588_vm13, 0.0, %v894_v29 }
 0x243   : > { %v927_v39 = vperm.slane %v921_v32, %v1920_v20  ;;  %v939_v40 = vperm.slane %v933_v34, %v1920_v20  ;;  %v943_v41 = vperm.slane %v935_v11, %v1920_v20  ;;  %v946_v42 = vrot.slane %v931_v33, 4 }
 0x244   : > { %v888_v43 = vrot.slane %v871_v35, 4  ;;  %v891_v44 = vsel %vm588_vm13, 0.0, %v890_v36  ;;  %v893_v46 = vsel %vm588_vm13, 0.0, %v892_v37  ;;  %v963_v45 = vsel %vm588_vm13, %v894_v29, %v883_v28 }
 0x245   : > { %v944_v47 = vrot.slane %v927_v39, 4  ;;  %v947_v48 = vsel %vm588_vm13, 0.0, %v946_v42  ;;  %v948_v49 = vrot.slane %v939_v40, 4  ;;  %v950_v50 = vrot.slane %v943_v41, 4 }
 0x246   : > { %v957_v51 = vrot.slane %v891_v44, 4  ;;  %v968_v52 = vrot.slane %v895_v38, 4  ;;  %v1011_v53 = vrot.slane %v947_v48, 4  ;;  %v889_v54 = vsel %vm588_vm13, 0.0, %v888_v43 }
 0x247   : > { %v949_v55 = vsel %vm588_vm13, 0.0, %v948_v49  ;;  %v951_v56 = vsel %vm588_vm13, 0.0, %v950_v50  ;;  %v1017_v57 = vsel %vm588_vm13, %v950_v50, %v939_v40  ;;  %v945_v58 = vsel %vm588_vm13, 0.0, %v944_v47 }
 0x248   : > { %v1022_v59 = vrot.slane %v951_v56, 4  ;;  %v952_v60 = vsel %vm588_vm13, %v890_v36, %v871_v35  ;;  %v958_v61 = vsel %vm588_vm13, %v957_v51, %v889_v54  ;;  %v967_v62 = vperm.slane %v963_v45, %v1907_v4 }
 0x249   : > { %v956_v0 = vperm.slane %v952_v60, %v1907_v4  ;;  %v962_v1 = vperm.slane %v958_v61, %v1907_v4  ;;  %v969_v2 = vsel %vm588_vm13, %v968_v52, %v893_v46  ;;  %v1006_v3 = vsel %vm588_vm13, %v946_v42, %v927_v39 }
 0x24a   : > { %v973_v5 = vperm.slane %v969_v2, %v1907_v4  ;;  %v988_v6 = vrot.slane %v967_v62, 4  ;;  %v1010_v8 = vperm.slane %v1006_v3, %v1907_v4  ;;  %v1012_v9 = vsel %vm588_vm13, %v1011_v53, %v945_v58 }
 0x24b   : > { %v976_v10 = vrot.slane %v956_v0, 4  ;;  %v1016_v11 = vperm.slane %v1012_v9, %v1907_v4  ;;  %v1021_v13 = vperm.slane %v1017_v57, %v1907_v4  ;;  %v1023_v14 = vsel %vm588_vm13, %v1022_v59, %v949_v55 }
 0x24c   : > { %v989_v16 = vsel %vm588_vm13, %v973_v5, %v988_v6  ;;  %v1027_v18 = vperm.slane %v1023_v14, %v1907_v4  ;;  %v1030_v19 = vrot.slane %v1010_v8, 4  ;;  %v974_v28 = vrot.slane %v962_v1, 4 }
 0x24d   : > { %v977_v29 = vsel %vm588_vm13, %v962_v1, %v976_v10  ;;  %v997_v30 = vperm.slane %v989_v16, %v1920_v20  ;;  %v1042_v31 = vrot.slane %v1021_v13, 4  ;;  %v986_v32 = vrot.slane %v973_v5, 4 }
 0x24e   : > { %v985_v33 = vperm.slane %v977_v29, %v1920_v20  ;;  %v1031_v34 = vsel %vm588_vm13, %v1016_v11, %v1030_v19  ;;  %v975_v35 = vsel %vm588_vm13, %v974_v28, %v956_v0  ;;  %v1028_v36 = vrot.slane %v1016_v11, 4  ;;  %v1265_v29 = vld [vmem:[%s1876_s21] sm:$0xf] }
 0x24f   : > { %v1002_v37 = vrot.slane %v997_v30, 4  ;;  %v1039_v38 = vperm.slane %v1031_v34, %v1920_v20  ;;  %v1043_v4 = vsel %vm588_vm13, %v1027_v18, %v1042_v31  ;;  %v981_v39 = vperm.slane %v975_v35, %v1920_v20 }
 0x250   : > { %v1051_v40 = vperm.slane %v1043_v4, %v1920_v20  ;;  %v987_v41 = vsel %vm588_vm13, %v986_v32, %v967_v62  ;;  %v1029_v42 = vsel %vm588_vm13, %v1028_v36, %v1010_v8  ;;  %v1040_v43 = vrot.slane %v1027_v18, 4 }
 0x251   : > { %v1003_v44 = vsel %vm588_vm13, %v1002_v37, %v985_v33  ;;  %v993_v46 = vperm.slane %v987_v41, %v1920_v20  ;;  %v1035_v45 = vperm.slane %v1029_v42, %v1920_v20  ;;  %v1004_v47 = vrot.slane %v985_v33, 4 }
 0x252   : > { %v1056_v48 = vrot.slane %v1051_v40, 4  ;;  %v1064_v49 = vpack.c.bf16 %v1003_v44, %v1003_v44  ;;  %v1041_v50 = vsel %vm588_vm13, %v1040_v43, %v1021_v13  ;;  %v1058_v51 = vrot.slane %v1039_v38, 4 }
 0x253   : > { %v998_v52 = vrot.slane %v993_v46, 4  ;;  %v1047_v53 = vperm.slane %v1041_v50, %v1920_v20  ;;  %v1005_v54 = vsel %vm588_vm13, %v997_v30, %v1004_v47  ;;  %v1000_v55 = vrot.slane %v981_v39, 4 }
 0x254   : > { %v1057_v56 = vsel %vm588_vm13, %v1056_v48, %v1039_v38  ;;  %v1136_v57 = vunpack.c.l.b16 %v1064_v49  ;;  %v1059_v58 = vsel %vm588_vm13, %v1051_v40, %v1058_v51  ;;  %v1066_v59 = vpack.c.bf16 %v1005_v54, %v1005_v54  ;;  %v1268_v38 = vpop.permute.xlu1 %1267  ;;  %v1263_v40 = vld [vmem:[#allocation2] sm:$0xff] }
 0x255   : > { %v1065_v60 = vpack.c.bf16 %v1057_v56, %v1057_v56  ;;  %v999_v61 = vsel %vm588_vm13, %v998_v52, %v981_v39  ;;  %v1052_v62 = vrot.slane %v1047_v53, 4  ;;  %v1067_v0 = vpack.c.bf16 %v1059_v58, %v1059_v58  ;;  %v1264_v56 = vld [vmem:[#allocation2 + $0x8] sm:$0xff] }
 0x256   : > { %v1060_v1 = vpack.c.bf16 %v999_v61, %v999_v61  ;;  %v1166_v2 = vunpack.c.l.b16 %v1066_v59  ;;  %v1001_v3 = vsel %vm588_vm13, %v993_v46, %v1000_v55  ;;  %v1054_v20 = vrot.slane %v1035_v45, 4 }
 0x257   : > { %v1137_v5 = vunpack.c.l.b16 %v1065_v60  ;;  %v1053_v6 = vsel %vm588_vm13, %v1052_v62, %v1035_v45  ;;  %v1167_v8 = vunpack.c.l.b16 %v1067_v0  ;;  %v1062_v9 = vpack.c.bf16 %v1001_v3, %v1001_v3 }
 0x258   : > { %v1061_v10 = vpack.c.bf16 %v1053_v6, %v1053_v6  ;;  %v1075_v11 = vunpack.c.l.b16 %v1060_v1  ;;  %v1055_v13 = vsel %vm588_vm13, %v1047_v53, %v1054_v20  ;;  %v1275_v35 = vsel %vm1273_vm15, %v1265_v29, 0 }
 0x259   : > { %v1138_v14 = vpack.c.b16 %v1137_v5, %v1136_v57  ;;  %v1168_v16 = vpack.c.b16 %v1167_v8, %v1166_v2  ;;  %v1063_v18 = vpack.c.bf16 %v1055_v13, %v1055_v13  ;;  %v1106_v19 = vunpack.c.l.b16 %v1062_v9 }
 0x25a   : > { %v1076_v28 = vunpack.c.l.b16 %v1061_v10 }
 0x25b   : > { %v1143_v30 = vsel %vm1078_vm14, %v1138_v14, 0  ;;  %v1173_v31 = vsel %vm1078_vm14, %v1168_v16, 0  ;;  %v1107_v32 = vunpack.c.l.b16 %v1063_v18 }
 0x25c   : > { %1152 = vmatpush.bf16.xpose.msra.mxu3 %v1143_v30  ;;  %v1077_v33 = vpack.c.b16 %v1076_v28, %v1075_v11  ;;  %1182 = vmatpush.bf16.xpose.msrb.mxu0 %v1173_v31 }
 0x25d   : > { %v1108_v34 = vpack.c.b16 %v1107_v32, %v1106_v19 }
 0x25e   : > { %v1083_v36 = vsel %vm1078_vm14, %v1077_v33, 0 }
 0x25f   : > { %1092 = vmatpush.bf16.xpose.msra.mxu1 %v1083_v36  ;;  %v1113_v37 = vsel %vm1078_vm14, %v1108_v34, 0 }
 0x260   : > { %1122 = vmatpush.bf16.xpose.msra.mxu2 %v1113_v37 }
 0x263   : > { %1585 = vmatmul.msk.bf16.vlgmr.msra.gmra.mxu3 %vm1078_vm14, %v1133_v15  ;;  %1586 = vmatmul.msk.bf16.vlgmr.msrb.gmra.mxu0 %vm1078_vm14, %v1163_v23 }
 0x266   : > { %1583 = vmatmul.msk.bf16.vlgmr.msra.gmra.mxu1 %vm1078_vm14, %v1072_v27 }
 0x267   : > { %1284 = vmatpush.bf16.msrb.mxu1 %v1275_v35  ;;  %1584 = vmatmul.msk.bf16.vlgmr.msra.gmra.mxu2 %vm1078_vm14, %v1103_v26 }
 0x276   : > { %1587 = vmatmul.msk.bf16.vlgmr.msrb.gmra.mxu1 %vm1269_vm0, %v1268_v38 }
 0x2e0   : > { %v1184_v7 = vpop.f32.mrf.mxu0 }
 0x2e1   : > { %v1195_v4 = vmul.f32 0.35355338, %v1184_v7 }
 0x2e3   : > { %v1094_v63 = vpop.f32.mrf.mxu1 }
 0x2e4   : > { %v1189_v12 = vmul.f32 0.35355338, %v1094_v63 }
 0x2e6   : > { %v1154_v15 = vpop.f32.mrf.mxu3  ;;  %1692 = vtanh.f32 %v1189_v12 }
 0x2e7   : > { %v1193_v17 = vmul.f32 0.35355338, %v1154_v15 }
 0x2e8   : > { %v1186_v24 = vpop.f32.mrf.mxu0 }
 0x2e9   : > { %1694 = vtanh.f32 %v1193_v17  ;;  %v1196_v44 = vmul.f32 0.35355338, %v1186_v24 }
 0x2ea   : > { %v1124_v23 = vpop.f32.mrf.mxu2 }
 0x2eb   : > { %v1096_v21 = vpop.f32.mrf.mxu1  ;;  %v1191_v25 = vmul.f32 0.35355338, %v1124_v23 }
 0x2ec   : > { %v1190_v22 = vmul.f32 0.35355338, %v1096_v21  ;;  %v1693_v39 = vpop.eup %1692 }
 0x2ed   : > { %1696 = vtanh.f32 %v1191_v25  ;;  %v1205_v48 = vsel %vm486_vm1, %v1693_v39, 0.0 }
 0x2ee   : > { %v1156_v27 = vpop.f32.mrf.mxu3  ;;  %1698 = vtanh.f32 %v1195_v4 }
 0x2ef   : > { %v1194_v26 = vmul.f32 0.35355338, %v1156_v27  ;;  %v1695_v41 = vpop.eup %1694  ;;  %1700 = vtanh.f32 %v1190_v22 }
 0x2f0   : > { %v1208_v52 = vsel %vm486_vm1, %v1695_v41, 0.0 }
 0x2f1   : > { %1702 = vtanh.f32 %v1194_v26 }
 0x2f2   : > { %v1126_v42 = vpop.f32.mrf.mxu2 }
 0x2f3   : > { %v1697_v43 = vpop.eup %1696  ;;  %v1192_v46 = vmul.f32 0.35355338, %v1126_v42  ;;  %v1286_v45 = vpop.f32.mrf.mxu1 }
 0x2f4   : > { %v1291_v47 = vadd.f32 %v1286_v45, %v1263_v40  ;;  %v1206_v49 = vsel %vm486_vm1, %v1697_v43, 0.0  ;;  %v1699_v50 = vpop.eup %1698 }
 0x2f5   : > { %1704 = vtanh.f32 %v1192_v46  ;;  %v1207_v51 = vadd.f32 %v1206_v49, %v1205_v48  ;;  %v1210_v54 = vsel %vm486_vm1, %v1699_v50, 0.0  ;;  %v1701_v55 = vpop.eup %1700 }
 0x2f6   : > { %1294 = vst.msk [vmem:[#allocation2] sm:$0xff] %vm1293_vm2, %v1291_v47  ;;  %1706 = vtanh.f32 %v1196_v44  ;;  %v1212_v62 = vsel %vm486_vm1, %v1701_v55, 0.0 }
 0x2f7   : > { %v1209_v53 = vadd.f32 %v1208_v52, %v1207_v51  ;;  %v1703_v58 = vpop.eup %1702 }
 0x2f8   : > { %v1215_v20 = vsel %vm486_vm1, %v1703_v58, 0.0 }
 0x2f9   : > { %v1211_v57 = vadd.f32 %v1210_v54, %v1209_v53 }
 0x2fb   : > { %v1705_v59 = vpop.eup %1704  ;;  %v1288_v60 = vpop.f32.mrf.mxu1  ;;  %v1219_v61 = vmul.f32 0.25, %v1211_v57 }
 0x2fc   : > { %v1213_v0 = vsel %vm486_vm1, %v1705_v59, 0.0  ;;  %v1292_v1 = vadd.f32 %v1288_v60, %v1264_v56  ;;  %v1707_v2 = vpop.eup %1706 }
 0x2fd   : > { %v1214_v3 = vadd.f32 %v1213_v0, %v1212_v62  ;;  %1221 = vxpose.xlu2.b32.start [1/2] (short) (narrow) %v1219_v61, 16  ;;  %v1217_v6 = vsel %vm486_vm1, %v1707_v2, 0.0 }
 0x2fe   : > { %1295 = vst.msk [vmem:[#allocation2 + $0x8] sm:$0xff] %vm1293_vm2, %v1292_v1 }
 0x2ff   : > { %v1216_v5 = vadd.f32 %v1215_v20, %v1214_v3 }
 0x301   : > { %v1218_v8 = vadd.f32 %v1217_v6, %v1216_v5 }
 0x303   : > { %v1220_v9 = vmul.f32 0.25, %v1218_v8 }
 0x305   : > { %1222 = vxpose.xlu2.b32.end [2/2] (short) (narrow) %v1220_v9, 16 }
 0x396   : > { %v1237_v10 = vpop.trf.xlu2 }
 0x397   : > { %v1253_v11 = vadd.f32 %v1237_v10, %v1219_v61 }
 0x399   : > { %v1255_v13 = vmul.f32 0.5, %v1253_v11 }
 0x39b   : > { %v1257_v14 = vpack.c.bf16 %v1255_v13, %v1255_v13 }
 0x39d   : > { %1260 = vst.msk [vmem:[%s1881_s25] sm:$0xf] %vm1259_vm3, %v1257_v14 }
 0x39e   : > { %v1238_v16 = vpop.trf.xlu2 }
 0x39f   : > { %v1254_v18 = vadd.f32 %v1238_v16, %v1220_v9 }
 0x3a1   : > { %v1256_v19 = vmul.f32 0.5, %v1254_v18  ;;  %1299 = sbr.rel (%p1588_p8) target bundleno = 1093 (0x445), region = 60 }
 0x3a3   : > { %v1258_v28 = vpack.c.bf16 %v1256_v19, %v1256_v19 }
 0x3a5   : > { %1261 = vst.msk [vmem:[%s1881_s25 + $0x4] sm:$0xf] %vm1259_vm3, %v1258_v28 }
 0x3a6   : > { %v1358_v29 = vld [vmem:[%s1871_s17] sm:$0xff]  ;;  %vm1331_vm1 = vcmask 1045504   ;;  %v1767_v32 = vmov 0   ;;  %v1301_v34 = vld [vmem:[#allocation2 + $0x8] sm:$0xff] }
 0x3a7   : > { %v1320_v30 = vld [vmem:[%s2175_s6] sm:$0x3f]  ;;  %1708 = vset.pattern.permute.xlu0 %v1767_v32  ;;  %v1359_v15 = vld [vmem:[%s1871_s17 + $0x8] sm:$0xff] }
 0x3a8   : > { %v1300_v31 = vld [vmem:[#allocation2] sm:$0xff]  ;;  %1591 = vmatpush.msk.msra.mxu0 %vm1331_vm1, %v1320_v30  ;;  %1362 = vperm.xlu0 %1708, %v1358_v29  }
 0x3a9   : > { %v1709_v33 = vld [vmem:[%s2189_s29] ss:$0 sm:$0xff]  ;;  %1599 = vmatpush.msk.msra.mxu1 %vm1331_vm1, %v1320_v30 }
 0x3aa   : > { %v1306_v35 = vadd.f32 %v1709_v33, %v1300_v31  ;;  %v1307_v36 = vadd.f32 %v1709_v33, %v1301_v34  ;;  %v1710_v22 = vld [vmem:[%s2190_s18] ss:$0 sm:$0xff] }
 0x3ac   : > { %v1310_v37 = vmin.f32 %v1306_v35, 0.0  ;;  %v1311_v38 = vmin.f32 %v1307_v36, 0.0  ;;  %vm1308_vm4 = vcmp.gt.f32.partialorder %v1306_v35, 0.0  ;;  %vm1309_vm5 = vcmp.gt.f32.partialorder %v1307_v36, 0.0 }
 0x3ae   : > { %v1312_v63 = vmul.f32 1.442695, %v1310_v37  ;;  %v1314_v7 = vmul.f32 1.442695, %v1311_v38 }
 0x3b0   : > { %1711 = vpow2.f32 %v1312_v63  ;;  %1367 = vperm.xlu0 %1708, %v1359_v15  }
 0x3b1   : > { %1713 = vpow2.f32 %v1314_v7 }
 0x3b6   : > { %v1712_v12 = vpop.eup %1711 }
 0x3b7   : > { %v1714_v17 = vpop.eup %1713  ;;  %v1589_v23 = vadd.f32 -1.0, %v1712_v12 }
 0x3b8   : > { %v1590_v4 = vadd.f32 -1.0, %v1714_v17 }
 0x3b9   : > { %v1318_v21 = vsel %vm1308_vm4, %v1306_v35, %v1589_v23 }
 0x3ba   : > { %1592 = vmatmul.msk.f32.vlgmr.msra.gmra.mxu0 %vm1293_vm2, %v1318_v21  ;;  %v1319_v25 = vsel %vm1309_vm5, %v1307_v36, %v1590_v4 }
 0x3bb   : > { %1593 = vmatmul.msk.f32.vlgmr.msra.gmra.mxu1 %vm1293_vm2, %v1319_v25 }
 0x41a   : > { %v1363_v27 = vpop.permute.xlu0 %1362 }
 0x422   : > { %v1368_v41 = vpop.permute.xlu0 %1367 }
 0x437   : > { %v1352_v24 = vpop.f32.mrf.mxu0 }
 0x438   : > { %v1353_v26 = vadd.f32 %v1710_v22, %v1352_v24  ;;  %v1355_v39 = vpop.f32.mrf.mxu1 }
 0x439   : > { %v1356_v40 = vadd.f32 %v1710_v22, %v1355_v39 }
 0x43a   : > { %v1370_v42 = vmul.f32 %v1363_v27, %v1353_v26 }
 0x43b   : > { %v1371_v43 = vmul.f32 %v1368_v41, %v1356_v40 }
 0x43c   : > { %1715 = vtanh.f32 %v1370_v42 }
 0x43d   : > { %1717 = vtanh.f32 %v1371_v43 }
 0x442   : > { %v1716_v44 = vpop.eup %1715 }
 0x443   : > { %v1718_v46 = vpop.eup %1717  ;;  %1374 = vst.msk [vmem:[%s1886_s12] sm:$0xff] %vm1269_vm0, %v1716_v44 }
 0x444   : > { %1375 = vst.msk [vmem:[%s1886_s12 + $0x8] sm:$0xff] %vm1269_vm0, %v1718_v46 }
 0x445 PF: > { %s2191_s19 = sld [smem:[#allocation5_spill]] }
 0x446   : > { %s2192_s30 = sld [smem:[#allocation3_spill]] }
 0x447   : > { %s2193_s10 = sld [smem:[#allocation4_spill]] }
 0x448   : > { %s2194_s11 = sld [smem:[#allocation6_spill]] }
 0x449   : > { %s2195_s12 = sld [smem:[#allocation7_spill]] }
 0x44b   : > { %s20_s13 = sadd.s32 1, %s2191_s19  }
 0x44c   : > { %p17_p9 = scmp.ge.s32.totalorder %s20_s13, 6  }
 0x44e   :  { %19 = sbr.rel (!%p17_p9) target bundleno = 4 (0x4), region = 114 }

</bundles_post_ra>
